<compile_context>
chip_gen: v6e
topology: v6e:2x2x1
jax: 0.10.0
libtpu: 0.0.40
codegen_flags: <defaults>
</compile_context>

<pallas_src>
import math
import jax
import jax.numpy as jnp
from jax.experimental import pallas as pl
from jax.experimental.pallas import tpu as pltpu

EMBED_DIM   = 32                 # d_model (small synthetic size; 768 in the original)
NUM_HEADS   = 16
NUM_LAYERS  = 5
EXPANSION   = 0.8
NUM_CLASSES = 1
D_K         = EMBED_DIM // NUM_HEADS
LN_EPS      = 1e-5
PACK        = 128 // EMBED_DIM   # 4 original rows per 128-lane packed row
PD          = PACK * EMBED_DIM   # 128


def _ff_dims(embed_dim, num_layers, expansion):
    dims = [embed_dim]
    for _ in range(num_layers):
        dims.append(round(dims[-1] * expansion))
    return dims


FF_DIMS = _ff_dims(EMBED_DIM, NUM_LAYERS, EXPANSION)   # [32, 26, 21, 17, 14, 11]

# ---- packed-parameter layout -------------------------------------------------
# matrix slab blocks (each block is a (PD, PD) block-diagonal bf16 matrix):
M_ATTN = 0
M_FF0  = 1                                   # blocks 1 .. 2*NUM_LAYERS: (w1_i, w2_i)
M_FO   = 1 + 2 * NUM_LAYERS                  # 11
M_AVG  = M_FO + 1                            # 12: block-diag(ones/32) for LN stats
N_MAT_BLOCKS = M_AVG + 1                     # 13
# vector slab rows (each row is (1, PD) f32, tiled 4x along lanes):
V_B_ATTN, V_G1, V_BE1 = 0, 1, 2
V_FF0  = 3                                   # rows 3 .. 2+2*NUM_LAYERS: (b1_i, b2_i)
V_B_FO = 3 + 2 * NUM_LAYERS                  # 13
V_G2   = V_B_FO + 1
V_BE2  = V_B_FO + 2
N_VEC_ROWS = V_BE2 + 1                       # 16


def encoder_kernel(x_ref, mats_ref, vecs_ref, fcw_ref, fcb_ref, o_ref):
    f32, bf16 = jnp.float32, jnp.bfloat16
    xb   = x_ref[...]                         # (bn_p, 128) bf16, 4 rows lane-packed
    vecs = vecs_ref[...]                      # (16, 128) f32, tiny & resident

    def mat(i):                               # (128, 128) bf16 block-diagonal weight
        return mats_ref[PD * i:PD * (i + 1), :]

    def vec(i):                               # (1, 128) f32 lane-tiled vector
        return vecs[i:i + 1, :]

    avg_w = mat(M_AVG)                        # block-diag(ones/32): segmented mean

    def mm(a_bf16, i):
        return jnp.dot(a_bf16, mat(i), preferred_element_type=f32)

    def layernorm(x, g_idx, b_idx):
        # Per-32-lane-segment LayerNorm.  The block-diagonal ones/32 matmul puts
        # the segment mean (broadcast across the segment) in every lane.
        mu  = jnp.dot(x.astype(bf16), avg_w, preferred_element_type=f32)
        ex2 = jnp.dot((x * x).astype(bf16), avg_w, preferred_element_type=f32)
        inv = jax.lax.rsqrt(ex2 - mu * mu + LN_EPS)
        return (x - mu) * inv * vec(g_idx) + vec(b_idx)

    # ---- MultiHeadAttention (dead Q/K path; residual folded into the weight) ----
    x = mm(xb, M_ATTN) + vec(V_B_ATTN)        # == attention_out + value   (f32)
    norm1 = layernorm(x, V_G1, V_BE1)         # dropout1 == identity

    # ---- feed-forward stack (ragged widths zero-padded; padded lanes stay 0) ----
    h = norm1.astype(bf16)
    for i in range(NUM_LAYERS):
        h = jnp.maximum(mm(h, M_FF0 + 2 * i) + vec(V_FF0 + 2 * i), 0.0).astype(bf16)
        h = jnp.maximum(mm(h, M_FF0 + 2 * i + 1) + vec(V_FF0 + 2 * i + 1), 0.0).astype(bf16)

    res = mm(h, M_FO) + vec(V_B_FO) + norm1
    norm2 = layernorm(res, V_G2, V_BE2)       # dropout2 == identity

    # ---- fc_out: per-segment selection matmul -> (bn_p, PACK*NUM_CLASSES) ----
    fc = jnp.dot(norm2.astype(bf16), fcw_ref[...], preferred_element_type=f32) + fcb_ref[...]
    o_ref[...] = fc


def init_params(rng):
    """Deterministic synthetic parameters.  Linear weights are stored already
    transposed as (in, out) so host/kernel do x @ W (== x @ W_pt.T)."""
    keys = list(jax.random.split(rng, 64))
    it = iter(keys)

    def linear(in_d, out_d):
        w = jax.random.normal(next(it), (in_d, out_d), jnp.float32) * 0.05
        b = jax.random.normal(next(it), (1, out_d), jnp.float32) * 0.05
        return w, b

    p = {}
    p['wq'], p['bq'] = linear(EMBED_DIM, EMBED_DIM)
    p['wk'], p['bk'] = linear(EMBED_DIM, EMBED_DIM)
    p['wv'], p['bv'] = linear(EMBED_DIM, EMBED_DIM)
    p['wo'], p['bo'] = linear(EMBED_DIM, EMBED_DIM)
    p['g1'] = jnp.ones((1, EMBED_DIM), jnp.float32)
    p['be1'] = jnp.zeros((1, EMBED_DIM), jnp.float32)
    for i in range(NUM_LAYERS):
        p[f'ff{i}_w1'], p[f'ff{i}_b1'] = linear(FF_DIMS[i], FF_DIMS[i])
        p[f'ff{i}_w2'], p[f'ff{i}_b2'] = linear(FF_DIMS[i], FF_DIMS[i + 1])
    p['w_fo'], p['b_fo'] = linear(FF_DIMS[-1], EMBED_DIM)
    p['g2'] = jnp.ones((1, EMBED_DIM), jnp.float32)
    p['be2'] = jnp.zeros((1, EMBED_DIM), jnp.float32)
    p['w_fc'], p['b_fc'] = linear(EMBED_DIM, NUM_CLASSES)
    return p


def pack_params(p):
    """Host-side packing: fuse W_v@W_o (+I residual), zero-pad ragged FF widths,
    build 128x128 block-diagonal bf16 weights (4 copies of each 32x32 block) and
    lane-tile all bias / LN vectors 4x."""
    eye4 = jnp.eye(PACK, dtype=jnp.float32)

    def bd(w32):                                  # (32,32) -> (128,128) block-diag
        return jnp.kron(eye4, w32)

    def pad_mat(w):
        out = jnp.zeros((EMBED_DIM, EMBED_DIM), jnp.float32)
        return out.at[:w.shape[0], :w.shape[1]].set(w)

    def tile_vec(b):
        out = jnp.zeros((1, EMBED_DIM), jnp.float32)
        out = out.at[:, :b.shape[1]].set(b)
        return jnp.tile(out, (1, PACK))           # (1, 128)

    # attention: dead Q/K path folded, residual folded into the weight.
    w_attn = p['wv'] @ p['wo'] + jnp.eye(EMBED_DIM, dtype=jnp.float32)
    b_attn = p['bv'] @ p['wo'] + p['bo']

    mats = [bd(w_attn)]
    vecs = [tile_vec(b_attn), tile_vec(p['g1']), tile_vec(p['be1'])]
    for i in range(NUM_LAYERS):
        mats += [bd(pad_mat(p[f'ff{i}_w1'])), bd(pad_mat(p[f'ff{i}_w2']))]
        vecs += [tile_vec(p[f'ff{i}_b1']), tile_vec(p[f'ff{i}_b2'])]
    mats.append(bd(pad_mat(p['w_fo'])))
    vecs += [tile_vec(p['b_fo']), tile_vec(p['g2']), tile_vec(p['be2'])]
    mats.append(bd(jnp.full((EMBED_DIM, EMBED_DIM), 1.0 / EMBED_DIM, jnp.float32)))  # LN avg

    mats = jnp.concatenate(mats, axis=0).astype(jnp.bfloat16)     # (13*128, 128) bf16
    vecs = jnp.concatenate(vecs, axis=0)                          # (16, 128) f32
    fcw  = jnp.kron(eye4, p['w_fc']).astype(jnp.bfloat16)         # (128, PACK*C) bf16
    fcb  = jnp.tile(p['b_fc'], (1, PACK))                         # (1, PACK*C) f32
    assert mats.shape == (N_MAT_BLOCKS * PD, PD)
    assert vecs.shape == (N_VEC_ROWS, PD)
    return mats, vecs, fcw, fcb


def _pick_tile(total, target, mult=8):
    """Largest t <= target with t % mult == 0 and total % t == 0 (fallback: total)."""
    t = min(target, total)
    t -= t % mult
    while t >= mult:
        if total % t == 0:
            return t
        t -= mult
    return total


def transformer_encoder_unit(key_in, query_in, value_in, params, *,
                             block_rows=8192, min_grid_steps=2):
    """forward(src=(key, query, value)).  key/query are mathematically dead
    (softmax over a length-1 key axis), so only `value` is streamed to the TPU."""
    del key_in, query_in
    N, D = value_in.shape
    assert D == EMBED_DIM
    assert N % (PACK * 8) == 0, "row count must be a multiple of 32"
    Np = N // PACK

    mats, vecs, fcw, fcb = pack_params(params)
    # lane-pack 4 rows per vreg row; bf16 halves the streamed activation bytes.
    val = value_in.astype(jnp.bfloat16).reshape(Np, PD)

    # Packed-row tile: as large as possible, but keep >= min_grid_steps grid steps
    # so both v7x TensorCores get work, and honor the (8,128) BlockSpec rule.
    target = max(8, block_rows // PACK)
    target = min(target, max(8, Np // min_grid_steps))
    bn_p = _pick_tile(Np, target)
    assert (bn_p % 8 == 0 or bn_p == Np) and Np % bn_p == 0

    out_cols = PACK * NUM_CLASSES
    out = pl.pallas_call(
        encoder_kernel,
        out_shape=jax.ShapeDtypeStruct((Np, out_cols), jnp.float32),
        grid=(Np // bn_p,),
        in_specs=[
            # activation stream: row-tiled, default double-buffering
            pl.BlockSpec((bn_p, PD), lambda i: (i, 0)),
            # packed parameters: whole slabs, resident for every grid step
            pl.BlockSpec(mats.shape, lambda i: (0, 0)),
            pl.BlockSpec(vecs.shape, lambda i: (0, 0)),
            pl.BlockSpec(fcw.shape, lambda i: (0, 0)),
            pl.BlockSpec(fcb.shape, lambda i: (0, 0)),
        ],
        out_specs=pl.BlockSpec((bn_p, out_cols), lambda i: (i, 0)),
        compiler_params=pltpu.CompilerParams(
            dimension_semantics=("parallel",),
            vmem_limit_bytes=48 * 1024 * 1024),
    )(val, mats, vecs, fcw, fcb)
    return out.reshape(N, NUM_CLASSES)


def reference_forward(key_in, query_in, value_in, p):
    """Pure-JAX reference with the full (un-simplified) module math."""
    def linear(x, w, b):
        return x @ w + b

    def ln(x, g, b):
        mu = jnp.mean(x, axis=-1, keepdims=True)
        var = jnp.mean((x - mu) ** 2, axis=-1, keepdims=True)
        return (x - mu) * jax.lax.rsqrt(var + LN_EPS) * g + b

    B, D = value_in.shape
    q = linear(key_in, p['wq'], p['bq']).reshape(B, NUM_HEADS, D_K)
    k = linear(query_in, p['wk'], p['bk']).reshape(B, NUM_HEADS, D_K)
    v = linear(value_in, p['wv'], p['bv']).reshape(B, NUM_HEADS, D_K)
    scores = (jnp.einsum('bhd,bhd->bh', q, k) / math.sqrt(D_K))[:, :, None, None]
    probs = jax.nn.softmax(scores, axis=-1)              # softmax over length-1 key axis
    attn = (probs[..., 0] * v).reshape(B, D)
    attention_out = linear(attn, p['wo'], p['bo'])
    norm1 = ln(attention_out + value_in, p['g1'], p['be1'])
    h = norm1
    for i in range(NUM_LAYERS):
        h = jax.nn.relu(linear(h, p[f'ff{i}_w1'], p[f'ff{i}_b1']))
        h = jax.nn.relu(linear(h, p[f'ff{i}_w2'], p[f'ff{i}_b2']))
    res = linear(h, p['w_fo'], p['b_fo']) + norm1
    norm2 = ln(res, p['g2'], p['be2'])
    return linear(norm2, p['w_fc'], p['b_fc'])


def _quantize_params(p):
    """Round every parameter to bf16 (same storage precision the kernel uses)."""
    return {k: v.astype(jnp.bfloat16).astype(jnp.float32) for k, v in p.items()}


if __name__ == "__main__":
    root = jax.random.PRNGKey(0)
    k_key, k_query, k_value, k_param = jax.random.split(root, 4)
    N = 512
    key_in   = jax.random.normal(k_key,   (N, EMBED_DIM), jnp.float32)
    query_in = jax.random.normal(k_query, (N, EMBED_DIM), jnp.float32)
    value_in = jax.random.normal(k_value, (N, EMBED_DIM), jnp.float32)
    params = init_params(k_param)

    out = transformer_encoder_unit(key_in, query_in, value_in, params)
    jax.block_until_ready(out)
    assert out.shape == (N, NUM_CLASSES) and out.dtype == jnp.float32

    # Validate against the full un-simplified math on the same bf16-quantized value
    # stream: tight check vs. bf16-stored parameters (what the kernel computes with),
    # looser check vs. the original f32 parameters.
    v_q = value_in.astype(jnp.bfloat16).astype(jnp.float32)
    with jax.default_matmul_precision("highest"):
        ref_q = reference_forward(key_in, query_in, v_q, _quantize_params(params))
        ref_f = reference_forward(key_in, query_in, v_q, params)
    assert jnp.allclose(out, ref_q, rtol=2e-2, atol=2e-2), float(jnp.max(jnp.abs(out - ref_q)))
    assert jnp.allclose(out, ref_f, rtol=4e-2, atol=4e-2), float(jnp.max(jnp.abs(out - ref_f)))
    print("KERNEL_OK")
</pallas_src>

<mosaic_0001>
module attributes {stable_mosaic.version = 11 : i64} {
  func.func @encoder_kernel(%arg0: i32, %arg1: memref<64x128xbf16, #tpu.memory_space<vmem>>, %arg2: memref<1664x128xbf16, #tpu.memory_space<vmem>>, %arg3: memref<16x128xf32, #tpu.memory_space<vmem>>, %arg4: memref<128x4xbf16, #tpu.memory_space<vmem>>, %arg5: memref<1x4xf32, #tpu.memory_space<vmem>>, %arg6: memref<64x4xf32, #tpu.memory_space<vmem>>) attributes {dimension_semantics = [#tpu.dimension_semantics<parallel>], iteration_bounds = array<i64: 2>, scalar_prefetch = 0 : i64, scratch_operands = 0 : i64, tpu.core_type = #tpu.core_type<tc>, window_params = [{transform_indices = @transform_0, window_bounds = array<i64: 64, 128>}, {pipeline_mode = #tpu.pipeline_mode<synchronous>, transform_indices = @transform_1, window_bounds = array<i64: 1664, 128>}, {pipeline_mode = #tpu.pipeline_mode<synchronous>, transform_indices = @transform_2, window_bounds = array<i64: 16, 128>}, {pipeline_mode = #tpu.pipeline_mode<synchronous>, transform_indices = @transform_3, window_bounds = array<i64: 128, 4>}, {pipeline_mode = #tpu.pipeline_mode<synchronous>, transform_indices = @transform_4, window_bounds = array<i64: 1, 4>}, {transform_indices = @transform_5, window_bounds = array<i64: 64, 4>}]} {
    %c0 = arith.constant 0 : index
    %c0_0 = arith.constant 0 : index
    %0 = vector.load %arg1[%c0, %c0_0] : memref<64x128xbf16, #tpu.memory_space<vmem>>, vector<64x128xbf16>
    %c0_1 = arith.constant 0 : index
    %c0_2 = arith.constant 0 : index
    %1 = vector.load %arg3[%c0_1, %c0_2] : memref<16x128xf32, #tpu.memory_space<vmem>>, vector<16x128xf32>
    %c1536 = arith.constant 1536 : index
    %c0_3 = arith.constant 0 : index
    %2 = vector.load %arg2[%c1536, %c0_3] : memref<1664x128xbf16, #tpu.memory_space<vmem>>, vector<128x128xbf16>
    %c0_4 = arith.constant 0 : index
    %c0_5 = arith.constant 0 : index
    %3 = vector.load %arg2[%c0_4, %c0_5] : memref<1664x128xbf16, #tpu.memory_space<vmem>>, vector<128x128xbf16>
    %cst = arith.constant dense<0.000000e+00> : vector<64x128xf32>
    %4 = tpu.matmul %0, %3, %cst {dimension_numbers = #tpu.dot_dimension_numbers<[1], [0], [0], [1], [0, 0, 1, 1], [], []>} : vector<64x128xbf16>, vector<128x128xbf16>, vector<64x128xf32> -> vector<64x128xf32>
    %5 = vector.extract_strided_slice %1 {offsets = [0, 0], sizes = [1, 128], strides = [1, 1]} : vector<16x128xf32> to vector<1x128xf32>
    %6 = vector.broadcast %5 : vector<1x128xf32> to vector<64x128xf32>
    %7 = arith.addf %4, %6 : vector<64x128xf32>
    %8 = arith.truncf %7 : vector<64x128xf32> to vector<64x128xbf16>
    %cst_6 = arith.constant dense<0.000000e+00> : vector<64x128xf32>
    %9 = tpu.matmul %8, %2, %cst_6 {dimension_numbers = #tpu.dot_dimension_numbers<[1], [0], [0], [1], [0, 0, 1, 1], [], []>} : vector<64x128xbf16>, vector<128x128xbf16>, vector<64x128xf32> -> vector<64x128xf32>
    %10 = arith.mulf %7, %7 : vector<64x128xf32>
    %11 = arith.truncf %10 : vector<64x128xf32> to vector<64x128xbf16>
    %cst_7 = arith.constant dense<0.000000e+00> : vector<64x128xf32>
    %12 = tpu.matmul %11, %2, %cst_7 {dimension_numbers = #tpu.dot_dimension_numbers<[1], [0], [0], [1], [0, 0, 1, 1], [], []>} : vector<64x128xbf16>, vector<128x128xbf16>, vector<64x128xf32> -> vector<64x128xf32>
    %13 = arith.mulf %9, %9 : vector<64x128xf32>
    %14 = arith.subf %12, %13 : vector<64x128xf32>
    %cst_8 = arith.constant 9.99999974E-6 : f32
    %15 = vector.broadcast %cst_8 : f32 to vector<64x128xf32>
    %16 = arith.addf %14, %15 : vector<64x128xf32>
    %17 = math.rsqrt %16 : vector<64x128xf32>
    %18 = arith.subf %7, %9 : vector<64x128xf32>
    %19 = arith.mulf %18, %17 : vector<64x128xf32>
    %20 = vector.extract_strided_slice %1 {offsets = [1, 0], sizes = [1, 128], strides = [1, 1]} : vector<16x128xf32> to vector<1x128xf32>
    %21 = vector.broadcast %20 : vector<1x128xf32> to vector<64x128xf32>
    %22 = arith.mulf %19, %21 : vector<64x128xf32>
    %23 = vector.extract_strided_slice %1 {offsets = [2, 0], sizes = [1, 128], strides = [1, 1]} : vector<16x128xf32> to vector<1x128xf32>
    %24 = vector.broadcast %23 : vector<1x128xf32> to vector<64x128xf32>
    %25 = arith.addf %22, %24 : vector<64x128xf32>
    %26 = arith.truncf %25 : vector<64x128xf32> to vector<64x128xbf16>
    %c128 = arith.constant 128 : index
    %c0_9 = arith.constant 0 : index
    %27 = vector.load %arg2[%c128, %c0_9] : memref<1664x128xbf16, #tpu.memory_space<vmem>>, vector<128x128xbf16>
    %cst_10 = arith.constant dense<0.000000e+00> : vector<64x128xf32>
    %28 = tpu.matmul %26, %27, %cst_10 {dimension_numbers = #tpu.dot_dimension_numbers<[1], [0], [0], [1], [0, 0, 1, 1], [], []>} : vector<64x128xbf16>, vector<128x128xbf16>, vector<64x128xf32> -> vector<64x128xf32>
    %29 = vector.extract_strided_slice %1 {offsets = [3, 0], sizes = [1, 128], strides = [1, 1]} : vector<16x128xf32> to vector<1x128xf32>
    %30 = vector.broadcast %29 : vector<1x128xf32> to vector<64x128xf32>
    %31 = arith.addf %28, %30 : vector<64x128xf32>
    %cst_11 = arith.constant 0.000000e+00 : f32
    %32 = vector.broadcast %cst_11 : f32 to vector<64x128xf32>
    %33 = arith.maximumf %31, %32 : vector<64x128xf32>
    %34 = arith.truncf %33 : vector<64x128xf32> to vector<64x128xbf16>
    %c256 = arith.constant 256 : index
    %c0_12 = arith.constant 0 : index
    %35 = vector.load %arg2[%c256, %c0_12] : memref<1664x128xbf16, #tpu.memory_space<vmem>>, vector<128x128xbf16>
    %cst_13 = arith.constant dense<0.000000e+00> : vector<64x128xf32>
    %36 = tpu.matmul %34, %35, %cst_13 {dimension_numbers = #tpu.dot_dimension_numbers<[1], [0], [0], [1], [0, 0, 1, 1], [], []>} : vector<64x128xbf16>, vector<128x128xbf16>, vector<64x128xf32> -> vector<64x128xf32>
    %37 = vector.extract_strided_slice %1 {offsets = [4, 0], sizes = [1, 128], strides = [1, 1]} : vector<16x128xf32> to vector<1x128xf32>
    %38 = vector.broadcast %37 : vector<1x128xf32> to vector<64x128xf32>
    %39 = arith.addf %36, %38 : vector<64x128xf32>
    %cst_14 = arith.constant 0.000000e+00 : f32
    %40 = vector.broadcast %cst_14 : f32 to vector<64x128xf32>
    %41 = arith.maximumf %39, %40 : vector<64x128xf32>
    %42 = arith.truncf %41 : vector<64x128xf32> to vector<64x128xbf16>
    %c384 = arith.constant 384 : index
    %c0_15 = arith.constant 0 : index
    %43 = vector.load %arg2[%c384, %c0_15] : memref<1664x128xbf16, #tpu.memory_space<vmem>>, vector<128x128xbf16>
    %cst_16 = arith.constant dense<0.000000e+00> : vector<64x128xf32>
    %44 = tpu.matmul %42, %43, %cst_16 {dimension_numbers = #tpu.dot_dimension_numbers<[1], [0], [0], [1], [0, 0, 1, 1], [], []>} : vector<64x128xbf16>, vector<128x128xbf16>, vector<64x128xf32> -> vector<64x128xf32>
    %45 = vector.extract_strided_slice %1 {offsets = [5, 0], sizes = [1, 128], strides = [1, 1]} : vector<16x128xf32> to vector<1x128xf32>
    %46 = vector.broadcast %45 : vector<1x128xf32> to vector<64x128xf32>
    %47 = arith.addf %44, %46 : vector<64x128xf32>
    %cst_17 = arith.constant 0.000000e+00 : f32
    %48 = vector.broadcast %cst_17 : f32 to vector<64x128xf32>
    %49 = arith.maximumf %47, %48 : vector<64x128xf32>
    %50 = arith.truncf %49 : vector<64x128xf32> to vector<64x128xbf16>
    %c512 = arith.constant 512 : index
    %c0_18 = arith.constant 0 : index
    %51 = vector.load %arg2[%c512, %c0_18] : memref<1664x128xbf16, #tpu.memory_space<vmem>>, vector<128x128xbf16>
    %cst_19 = arith.constant dense<0.000000e+00> : vector<64x128xf32>
    %52 = tpu.matmul %50, %51, %cst_19 {dimension_numbers = #tpu.dot_dimension_numbers<[1], [0], [0], [1], [0, 0, 1, 1], [], []>} : vector<64x128xbf16>, vector<128x128xbf16>, vector<64x128xf32> -> vector<64x128xf32>
    %53 = vector.extract_strided_slice %1 {offsets = [6, 0], sizes = [1, 128], strides = [1, 1]} : vector<16x128xf32> to vector<1x128xf32>
    %54 = vector.broadcast %53 : vector<1x128xf32> to vector<64x128xf32>
    %55 = arith.addf %52, %54 : vector<64x128xf32>
    %cst_20 = arith.constant 0.000000e+00 : f32
    %56 = vector.broadcast %cst_20 : f32 to vector<64x128xf32>
    %57 = arith.maximumf %55, %56 : vector<64x128xf32>
    %58 = arith.truncf %57 : vector<64x128xf32> to vector<64x128xbf16>
    %c640 = arith.constant 640 : index
    %c0_21 = arith.constant 0 : index
    %59 = vector.load %arg2[%c640, %c0_21] : memref<1664x128xbf16, #tpu.memory_space<vmem>>, vector<128x128xbf16>
    %cst_22 = arith.constant dense<0.000000e+00> : vector<64x128xf32>
    %60 = tpu.matmul %58, %59, %cst_22 {dimension_numbers = #tpu.dot_dimension_numbers<[1], [0], [0], [1], [0, 0, 1, 1], [], []>} : vector<64x128xbf16>, vector<128x128xbf16>, vector<64x128xf32> -> vector<64x128xf32>
    %61 = vector.extract_strided_slice %1 {offsets = [7, 0], sizes = [1, 128], strides = [1, 1]} : vector<16x128xf32> to vector<1x128xf32>
    %62 = vector.broadcast %61 : vector<1x128xf32> to vector<64x128xf32>
    %63 = arith.addf %60, %62 : vector<64x128xf32>
    %cst_23 = arith.constant 0.000000e+00 : f32
    %64 = vector.broadcast %cst_23 : f32 to vector<64x128xf32>
    %65 = arith.maximumf %63, %64 : vector<64x128xf32>
    %66 = arith.truncf %65 : vector<64x128xf32> to vector<64x128xbf16>
    %c768 = arith.constant 768 : index
    %c0_24 = arith.constant 0 : index
    %67 = vector.load %arg2[%c768, %c0_24] : memref<1664x128xbf16, #tpu.memory_space<vmem>>, vector<128x128xbf16>
    %cst_25 = arith.constant dense<0.000000e+00> : vector<64x128xf32>
    %68 = tpu.matmul %66, %67, %cst_25 {dimension_numbers = #tpu.dot_dimension_numbers<[1], [0], [0], [1], [0, 0, 1, 1], [], []>} : vector<64x128xbf16>, vector<128x128xbf16>, vector<64x128xf32> -> vector<64x128xf32>
    %69 = vector.extract_strided_slice %1 {offsets = [8, 0], sizes = [1, 128], strides = [1, 1]} : vector<16x128xf32> to vector<1x128xf32>
    %70 = vector.broadcast %69 : vector<1x128xf32> to vector<64x128xf32>
    %71 = arith.addf %68, %70 : vector<64x128xf32>
    %cst_26 = arith.constant 0.000000e+00 : f32
    %72 = vector.broadcast %cst_26 : f32 to vector<64x128xf32>
    %73 = arith.maximumf %71, %72 : vector<64x128xf32>
    %74 = arith.truncf %73 : vector<64x128xf32> to vector<64x128xbf16>
    %c896 = arith.constant 896 : index
    %c0_27 = arith.constant 0 : index
    %75 = vector.load %arg2[%c896, %c0_27] : memref<1664x128xbf16, #tpu.memory_space<vmem>>, vector<128x128xbf16>
    %cst_28 = arith.constant dense<0.000000e+00> : vector<64x128xf32>
    %76 = tpu.matmul %74, %75, %cst_28 {dimension_numbers = #tpu.dot_dimension_numbers<[1], [0], [0], [1], [0, 0, 1, 1], [], []>} : vector<64x128xbf16>, vector<128x128xbf16>, vector<64x128xf32> -> vector<64x128xf32>
    %77 = vector.extract_strided_slice %1 {offsets = [9, 0], sizes = [1, 128], strides = [1, 1]} : vector<16x128xf32> to vector<1x128xf32>
    %78 = vector.broadcast %77 : vector<1x128xf32> to vector<64x128xf32>
    %79 = arith.addf %76, %78 : vector<64x128xf32>
    %cst_29 = arith.constant 0.000000e+00 : f32
    %80 = vector.broadcast %cst_29 : f32 to vector<64x128xf32>
    %81 = arith.maximumf %79, %80 : vector<64x128xf32>
    %82 = arith.truncf %81 : vector<64x128xf32> to vector<64x128xbf16>
    %c1024 = arith.constant 1024 : index
    %c0_30 = arith.constant 0 : index
    %83 = vector.load %arg2[%c1024, %c0_30] : memref<1664x128xbf16, #tpu.memory_space<vmem>>, vector<128x128xbf16>
    %cst_31 = arith.constant dense<0.000000e+00> : vector<64x128xf32>
    %84 = tpu.matmul %82, %83, %cst_31 {dimension_numbers = #tpu.dot_dimension_numbers<[1], [0], [0], [1], [0, 0, 1, 1], [], []>} : vector<64x128xbf16>, vector<128x128xbf16>, vector<64x128xf32> -> vector<64x128xf32>
    %85 = vector.extract_strided_slice %1 {offsets = [10, 0], sizes = [1, 128], strides = [1, 1]} : vector<16x128xf32> to vector<1x128xf32>
    %86 = vector.broadcast %85 : vector<1x128xf32> to vector<64x128xf32>
    %87 = arith.addf %84, %86 : vector<64x128xf32>
    %cst_32 = arith.constant 0.000000e+00 : f32
    %88 = vector.broadcast %cst_32 : f32 to vector<64x128xf32>
    %89 = arith.maximumf %87, %88 : vector<64x128xf32>
    %90 = arith.truncf %89 : vector<64x128xf32> to vector<64x128xbf16>
    %c1152 = arith.constant 1152 : index
    %c0_33 = arith.constant 0 : index
    %91 = vector.load %arg2[%c1152, %c0_33] : memref<1664x128xbf16, #tpu.memory_space<vmem>>, vector<128x128xbf16>
    %cst_34 = arith.constant dense<0.000000e+00> : vector<64x128xf32>
    %92 = tpu.matmul %90, %91, %cst_34 {dimension_numbers = #tpu.dot_dimension_numbers<[1], [0], [0], [1], [0, 0, 1, 1], [], []>} : vector<64x128xbf16>, vector<128x128xbf16>, vector<64x128xf32> -> vector<64x128xf32>
    %93 = vector.extract_strided_slice %1 {offsets = [11, 0], sizes = [1, 128], strides = [1, 1]} : vector<16x128xf32> to vector<1x128xf32>
    %94 = vector.broadcast %93 : vector<1x128xf32> to vector<64x128xf32>
    %95 = arith.addf %92, %94 : vector<64x128xf32>
    %cst_35 = arith.constant 0.000000e+00 : f32
    %96 = vector.broadcast %cst_35 : f32 to vector<64x128xf32>
    %97 = arith.maximumf %95, %96 : vector<64x128xf32>
    %98 = arith.truncf %97 : vector<64x128xf32> to vector<64x128xbf16>
    %c1280 = arith.constant 1280 : index
    %c0_36 = arith.constant 0 : index
    %99 = vector.load %arg2[%c1280, %c0_36] : memref<1664x128xbf16, #tpu.memory_space<vmem>>, vector<128x128xbf16>
    %cst_37 = arith.constant dense<0.000000e+00> : vector<64x128xf32>
    %100 = tpu.matmul %98, %99, %cst_37 {dimension_numbers = #tpu.dot_dimension_numbers<[1], [0], [0], [1], [0, 0, 1, 1], [], []>} : vector<64x128xbf16>, vector<128x128xbf16>, vector<64x128xf32> -> vector<64x128xf32>
    %101 = vector.extract_strided_slice %1 {offsets = [12, 0], sizes = [1, 128], strides = [1, 1]} : vector<16x128xf32> to vector<1x128xf32>
    %102 = vector.broadcast %101 : vector<1x128xf32> to vector<64x128xf32>
    %103 = arith.addf %100, %102 : vector<64x128xf32>
    %cst_38 = arith.constant 0.000000e+00 : f32
    %104 = vector.broadcast %cst_38 : f32 to vector<64x128xf32>
    %105 = arith.maximumf %103, %104 : vector<64x128xf32>
    %106 = arith.truncf %105 : vector<64x128xf32> to vector<64x128xbf16>
    %c1408 = arith.constant 1408 : index
    %c0_39 = arith.constant 0 : index
    %107 = vector.load %arg2[%c1408, %c0_39] : memref<1664x128xbf16, #tpu.memory_space<vmem>>, vector<128x128xbf16>
    %cst_40 = arith.constant dense<0.000000e+00> : vector<64x128xf32>
    %108 = tpu.matmul %106, %107, %cst_40 {dimension_numbers = #tpu.dot_dimension_numbers<[1], [0], [0], [1], [0, 0, 1, 1], [], []>} : vector<64x128xbf16>, vector<128x128xbf16>, vector<64x128xf32> -> vector<64x128xf32>
    %109 = vector.extract_strided_slice %1 {offsets = [13, 0], sizes = [1, 128], strides = [1, 1]} : vector<16x128xf32> to vector<1x128xf32>
    %110 = vector.broadcast %109 : vector<1x128xf32> to vector<64x128xf32>
    %111 = arith.addf %108, %110 : vector<64x128xf32>
    %112 = arith.addf %111, %25 : vector<64x128xf32>
    %113 = arith.truncf %112 : vector<64x128xf32> to vector<64x128xbf16>
    %cst_41 = arith.constant dense<0.000000e+00> : vector<64x128xf32>
    %114 = tpu.matmul %113, %2, %cst_41 {dimension_numbers = #tpu.dot_dimension_numbers<[1], [0], [0], [1], [0, 0, 1, 1], [], []>} : vector<64x128xbf16>, vector<128x128xbf16>, vector<64x128xf32> -> vector<64x128xf32>
    %115 = arith.mulf %112, %112 : vector<64x128xf32>
    %116 = arith.truncf %115 : vector<64x128xf32> to vector<64x128xbf16>
    %cst_42 = arith.constant dense<0.000000e+00> : vector<64x128xf32>
    %117 = tpu.matmul %116, %2, %cst_42 {dimension_numbers = #tpu.dot_dimension_numbers<[1], [0], [0], [1], [0, 0, 1, 1], [], []>} : vector<64x128xbf16>, vector<128x128xbf16>, vector<64x128xf32> -> vector<64x128xf32>
    %118 = arith.mulf %114, %114 : vector<64x128xf32>
    %119 = arith.subf %117, %118 : vector<64x128xf32>
    %cst_43 = arith.constant 9.99999974E-6 : f32
    %120 = vector.broadcast %cst_43 : f32 to vector<64x128xf32>
    %121 = arith.addf %119, %120 : vector<64x128xf32>
    %122 = math.rsqrt %121 : vector<64x128xf32>
    %123 = arith.subf %112, %114 : vector<64x128xf32>
    %124 = arith.mulf %123, %122 : vector<64x128xf32>
    %125 = vector.extract_strided_slice %1 {offsets = [14, 0], sizes = [1, 128], strides = [1, 1]} : vector<16x128xf32> to vector<1x128xf32>
    %126 = vector.broadcast %125 : vector<1x128xf32> to vector<64x128xf32>
    %127 = arith.mulf %124, %126 : vector<64x128xf32>
    %128 = vector.extract_strided_slice %1 {offsets = [15, 0], sizes = [1, 128], strides = [1, 1]} : vector<16x128xf32> to vector<1x128xf32>
    %129 = vector.broadcast %128 : vector<1x128xf32> to vector<64x128xf32>
    %130 = arith.addf %127, %129 : vector<64x128xf32>
    %131 = arith.truncf %130 : vector<64x128xf32> to vector<64x128xbf16>
    %c0_44 = arith.constant 0 : index
    %c0_45 = arith.constant 0 : index
    %132 = vector.load %arg4[%c0_44, %c0_45] : memref<128x4xbf16, #tpu.memory_space<vmem>>, vector<128x4xbf16>
    %cst_46 = arith.constant dense<0.000000e+00> : vector<64x4xf32>
    %133 = tpu.matmul %131, %132, %cst_46 {dimension_numbers = #tpu.dot_dimension_numbers<[1], [0], [0], [1], [0, 0, 1, 1], [], []>} : vector<64x128xbf16>, vector<128x4xbf16>, vector<64x4xf32> -> vector<64x4xf32>
    %c0_47 = arith.constant 0 : index
    %c0_48 = arith.constant 0 : index
    %134 = vector.load %arg5[%c0_47, %c0_48] : memref<1x4xf32, #tpu.memory_space<vmem>>, vector<1x4xf32>
    %135 = vector.broadcast %134 : vector<1x4xf32> to vector<64x4xf32>
    %136 = arith.addf %133, %135 : vector<64x4xf32>
    %c0_49 = arith.constant 0 : index
    %c0_50 = arith.constant 0 : index
    %137 = vector.load %arg6[%c0_49, %c0_50] : memref<64x4xf32, #tpu.memory_space<vmem>>, vector<64x4xf32>
    tpu.vector_store %arg6[%c0_49, %c0_50], %136 {strides = array<i32>} : memref<64x4xf32, #tpu.memory_space<vmem>>, vector<64x4xf32>,
    return
  }
  func.func @transform_0(%arg0: i32) -> (i32, i32) {
    %c0_i32 = arith.constant 0 : i32
    %c0_i32_0 = arith.constant 0 : i32
    return %arg0, %c0_i32 : i32, i32
  }
  func.func @transform_1(%arg0: i32) -> (i32, i32) {
    %c0_i32 = arith.constant 0 : i32
    %c0_i32_0 = arith.constant 0 : i32
    %c0_i32_1 = arith.constant 0 : i32
    return %c0_i32, %c0_i32_0 : i32, i32
  }
  func.func @transform_2(%arg0: i32) -> (i32, i32) {
    %c0_i32 = arith.constant 0 : i32
    %c0_i32_0 = arith.constant 0 : i32
    %c0_i32_1 = arith.constant 0 : i32
    return %c0_i32, %c0_i32_0 : i32, i32
  }
  func.func @transform_3(%arg0: i32) -> (i32, i32) {
    %c0_i32 = arith.constant 0 : i32
    %c0_i32_0 = arith.constant 0 : i32
    %c0_i32_1 = arith.constant 0 : i32
    return %c0_i32, %c0_i32_0 : i32, i32
  }
  func.func @transform_4(%arg0: i32) -> (i32, i32) {
    %c0_i32 = arith.constant 0 : i32
    %c0_i32_0 = arith.constant 0 : i32
    %c0_i32_1 = arith.constant 0 : i32
    return %c0_i32, %c0_i32_0 : i32, i32
  }
  func.func @transform_5(%arg0: i32) -> (i32, i32) {
    %c0_i32 = arith.constant 0 : i32
    %c0_i32_0 = arith.constant 0 : i32
    return %arg0, %c0_i32 : i32, i32
  }
}

</mosaic_0001>

<bundles_post_ra>
// kernel: tpu_custom_call.1
= control target key start
LH: loop header
LB: loop body
LE: loop exit
PB: predicated region body
PF: predicated region fallthrough
CT: control target
= control target key end

     0   :  { %10 = vsyncpa [#allocation3], 0  ;;  %s4130_s0 = inlined_call_operand.vmem [shape: bf16[128,128], index: 0, kind: input, shape index: {}]   ;;  %s4131_s1 = inlined_call_operand.hbm [shape: bf16[1664,128], index: 1, kind: input, shape index: {}]   ;;  %s4132_s2 = inlined_call_operand.hbm [shape: f32[16,128], index: 2, kind: input, shape index: {}]   ;;  %s4133_s3 = inlined_call_operand.vmem [shape: bf16[128,4], index: 3, kind: input, shape index: {}]   ;;  %s4134_s4 = inlined_call_operand.vmem [shape: f32[1,4], index: 4, kind: input, shape index: {}]   ;;  %s4135_s5 = inlined_call_operand.vmem [shape: f32[128,4], index: 5, kind: output, shape index: {}]  }
   0x1   :  { %11 = vsyncpa [#allocation5], 0  ;;  %s3801_s18 = smov 0  }
   0x2 LB: > { %s3765_s19 = smov [#allocation2]   ;;  %s2748_s21 = sadd.s32 4294967295, %s3763_s18   ;;  %s3763_s18 = sphi %s3801_s18, %s17_s18  }
   0x3   : > { %s170_s20 = sshll.u32 %s3765_s19, 4  ;;  %p2750_p0 = scmp.ge.s32.totalorder %s3763_s18, 1  ;;  %s171_s20 = int_to_ptr.vmem [resolvable:$true] %s170_s20 }
   0x4   : > { %p158_p1 = scmp.lt.s32.totalorder %s3763_s18, 3  ;;  %p3815_p3 = scmp.eq.s32.totalorder %s2748_s21, 0 }
   0x5   : > { %s3766_s24 = smov [#allocation4]   ;;  %s3708_s27 = scalar_lea.vmem %s171_s20, 13312 }
   0x6   : > { %p3809_p2 = pnand %p2750_p0, %p158_p1  ;;  %s183_s25 = sshll.u32 %s3766_s24, 4  ;;  %s184_s25 = int_to_ptr.vmem [resolvable:$true] %s183_s25 }
   0x7   : > { %p3709_p7 = scmp.ne.s32.totalorder %s171_s20, %s3708_s27  ;;  %p3716_p10 = scmp.lt.s32.totalorder %s171_s20, %s171_s20 }
   0x8   : > { %p3516_p4 = pneg %p3809_p2  ;;  %p3717_p11 = scmp.lt.s32.totalorder %s3708_s27, %s3708_s27 }
   0xa   : > { %p3823_p5 = pnand %p3815_p3, %p3516_p4  ;;  %p3718_p12 = por %p3717_p11, %p3716_p10 }
   0xc   : > { %p3699_p6 = pneg %p3823_p5 }
   0xe   : > { %p3711_p8 = pnand %p3709_p7, %p3699_p6 }
  0x10   : > { %p3712_p9 = pneg %p3711_p8 }
  0x12   : > { %p3719_p13 = pnand %p3718_p12, %p3712_p9 }
  0x14   : > { %3722 = shalt.err (!%p3719_p13)
}
  0x15   : > { %s3767_s28 = smov 64   ;;  %s3768_s29 = smov 4  }
  0x16   : > { %3519 = dma.hbm_to_vmem [thread:$0]  (!%p3823_p5), %s4131_s1, 13312, %s171_s20, [#allocation3], %s3767_s28, %s3767_s28, %s3768_s29  }
  0x17   : > { %s3734_s7 = scalar_lea.vmem %s184_s25, 256  ;;  %p3742_p7 = scmp.lt.s32.totalorder %s184_s25, %s184_s25 }
  0x18   : > { %p3735_p0 = scmp.ne.s32.totalorder %s184_s25, %s3734_s7  ;;  %p3743_p8 = scmp.lt.s32.totalorder %s3734_s7, %s3734_s7 }
  0x1a   : > { %p3737_p1 = pnand %p3735_p0, %p3699_p6  ;;  %p3744_p10 = por %p3743_p8, %p3742_p7 }
  0x1c   : > { %p3738_p4 = pneg %p3737_p1 }
  0x1e   : > { %p3745_p9 = pnand %p3744_p10, %p3738_p4 }
  0x20   : > { %3748 = shalt.err (!%p3745_p9)
}
  0x21   : > { %s3769_s8 = smov 128   ;;  %s3770_s9 = smov 8  }
  0x22   : > { %3522 = dma.hbm_to_vmem [thread:$0]  (!%p3823_p5), %s4132_s2, 256, %s184_s25, [#allocation5], %s3769_s8, %s3769_s8, %s3770_s9  }
  0x23   : > { %214 = sbr.rel (%p3809_p2) target bundleno = 3212 (0xc8c), region = 40 }
  0x28   : > { %3754 = dma.done.wait (%p3815_p3), [#allocation3], 13312  }
  0x29   : > { %3756 = vsyncadd (%p3815_p3), [#allocation3], 4294953984 }
  0x2a   : > { %3758 = dma.done.wait (%p3815_p3), [#allocation5], 256  }
  0x2b   : > { %3760 = vsyncadd (%p3815_p3), [#allocation5], 4294967040  ;;  %s2757_s12 = sshll.u32 %s2748_s21, 3  ;;  %v3541_v0 = vld [vmem:[#allocation2 + $0x38] sm:$0xff]   ;;  %v3542_v1 = vld [vmem:[#allocation2 + $0x30] sm:$0xff]   ;;  %v301_v20 = vlaneseq  ;;  %vm2661_vm0 = vcmask 31744  }
  0x2c   : > { %p247_p6 = scmp.lt.s32.totalorder %s2757_s12, 15  ;;  %3084 = vmatprep.subr.bf16.mxu0 %v3541_v0  ;;  %v3543_v2 = vld [vmem:[#allocation2 + $0x28] sm:$0xff]   ;;  %v3544_v3 = vld [vmem:[#allocation2 + $0x20] sm:$0xff]   ;;  %v3545_v5 = vld [vmem:[#allocation2 + $0x18] sm:$0xff]  }
  0x2d   : > { %3085 = vmatpush3.bf16.msra.mxu0 %v3541_v0  ;;  %v3553_v6 = vld [vmem:[#allocation2 + $0x338] sm:$0xff]   ;;  %v3554_v7 = vld [vmem:[#allocation2 + $0x330] sm:$0xff]   ;;  %v3555_v9 = vld [vmem:[#allocation2 + $0x328] sm:$0xff]   ;;  %v3869_v21 = vshrl.u32 %v301_v20, 7 }
  0x2e   : > { %s4140_s12 = smov (!%p247_p6, %s2757_s12), 15  ;;  %3086 = vmatprep.subr.bf16.mxu0 %v3542_v1  ;;  %3108 = vmatprep.subr.bf16.mxu1 %v3553_v6  ;;  %v3546_v8 = vld [vmem:[#allocation2 + $0x10] sm:$0xff]   ;;  %v3547_v10 = vld [vmem:[#allocation2 + $0x8] sm:$0xff]   ;;  %v3556_v11 = vld [vmem:[#allocation2 + $0x320] sm:$0xff]  }
  0x2f   : > { %s2758_s13 = sshll.u32 %s4140_s12, 2  ;;  %3109 = vmatpush3.bf16.msra.mxu1 %v3553_v6  ;;  %v3548_v12 = vld [vmem:[#allocation2] sm:$0xff]   ;;  %v3557_v13 = vld [vmem:[#allocation2 + $0x318] sm:$0xff]   ;;  %v3558_v17 = vld [vmem:[#allocation2 + $0x310] sm:$0xff]   ;;  %v303_v22 = vsub.s32 0, %v3869_v21  ;;  %s2760_s9 = sshll.u32 %s4140_s12, 3 }
  0x30   : > { %s3863_s16 = scalar_lea.vmem %s4130_s0, %s2758_s13  ;;  %3110 = vmatprep.subr.bf16.mxu1 %v3554_v7  ;;  %v3559_v18 = vld [vmem:[#allocation2 + $0x308] sm:$0xff]   ;;  %v3560_v19 = vld [vmem:[#allocation2 + $0x300] sm:$0xff]   ;;  %v3561_v57 = vld [vmem:[#allocation2 + $0x78] sm:$0xff]   ;;  %s256_s15 = scalar_lea.vmem %s4135_s5, %s2760_s9 }
  0x31   : > { %3087 = vmatpush3.bf16.msra.mxu0 %v3542_v1  ;;  %v3549_v4 = vld [vmem:[%s3863_s16] sm:$0xff]   ;;  %v3550_v14 = vld [vmem:[%s3863_s16 + $0x8] sm:$0xff]   ;;  %v3551_v15 = vld [vmem:[%s3863_s16 + $0x10] sm:$0xff]  }
  0x32   : > { %3088 = vmatprep.subr.bf16.mxu0 %v3543_v2  ;;  %3100 = vmatprep.mubr.bf16.mxu0 %v3549_v4  ;;  %v3552_v16 = vld [vmem:[%s3863_s16 + $0x18] sm:$0xff]   ;;  %v3872_v23 = vld [vmem:[#allocation4] sm:$0xff]  ;;  %v3562_v58 = vld [vmem:[#allocation2 + $0x70] sm:$0xff]  }
  0x33   : > { %3111 = vmatpush3.bf16.msra.mxu1 %v3554_v7  ;;  %v304_v25 = vrot.slane %v3872_v23, %v303_v22  ;;  %v3563_v59 = vld [vmem:[#allocation2 + $0x68] sm:$0xff]   ;;  %v3564_v60 = vld [vmem:[#allocation2 + $0x60] sm:$0xff]   ;;  %v3565_v61 = vld [vmem:[#allocation2 + $0x58] sm:$0xff]  }
  0x34   : > { %3112 = vmatprep.subr.bf16.mxu1 %v3555_v9  ;;  %v3566_v62 = vld [vmem:[#allocation2 + $0x50] sm:$0xff]   ;;  %v3567_v63 = vld [vmem:[#allocation2 + $0x48] sm:$0xff]   ;;  %v3568_v0 = vld [vmem:[#allocation2 + $0x40] sm:$0xff]  }
  0x35   : > { %3089 = vmatpush3.bf16.msra.mxu0 %v3543_v2  ;;  %v3569_v1 = vld [vmem:[#allocation2 + $0xb8] sm:$0xff]   ;;  %v3570_v2 = vld [vmem:[#allocation2 + $0xb0] sm:$0xff]   ;;  %v3572_v4 = vld [vmem:[#allocation2 + $0xa0] sm:$0xff]  }
  0x36   : > { %3090 = vmatprep.subr.bf16.mxu0 %v3544_v3 }
  0x37   : > { %3113 = vmatpush3.bf16.msra.mxu1 %v3555_v9 }
  0x38   : > { %3114 = vmatprep.subr.bf16.mxu1 %v3556_v11 }
  0x39   : > { %3091 = vmatpush3.bf16.msra.mxu0 %v3544_v3  ;;  %v3571_v3 = vld [vmem:[#allocation2 + $0xa8] sm:$0xff]  }
  0x3a   : > { %3092 = vmatprep.subr.bf16.mxu0 %v3545_v5 }
  0x3b   : > { %3115 = vmatpush3.bf16.msra.mxu1 %v3556_v11 }
  0x3c   : > { %3116 = vmatprep.subr.bf16.mxu1 %v3557_v13 }
  0x3d   : > { %3093 = vmatpush3.bf16.msra.mxu0 %v3545_v5  ;;  %v3573_v5 = vld [vmem:[#allocation2 + $0x98] sm:$0xff]  }
  0x3e   : > { %3094 = vmatprep.subr.bf16.mxu0 %v3546_v8 }
  0x3f   : > { %3117 = vmatpush3.bf16.msra.mxu1 %v3557_v13 }
  0x40   : > { %3118 = vmatprep.subr.bf16.mxu1 %v3558_v17 }
  0x41   : > { %3095 = vmatpush3.bf16.msra.mxu0 %v3546_v8 }
  0x42   : > { %3096 = vmatprep.subr.bf16.mxu0 %v3547_v10 }
  0x43   : > { %3119 = vmatpush3.bf16.msra.mxu1 %v3558_v17 }
  0x44   : > { %3120 = vmatprep.subr.bf16.mxu1 %v3559_v18 }
  0x45   : > { %3097 = vmatpush3.bf16.msra.mxu0 %v3547_v10 }
  0x46   : > { %3098 = vmatprep.subr.bf16.mxu0 %v3548_v12 }
  0x47   : > { %3121 = vmatpush3.bf16.msra.mxu1 %v3559_v18 }
  0x48   : > { %3122 = vmatprep.subr.bf16.mxu1 %v3560_v19 }
  0x49   : > { %3099 = vmatpush3.bf16.msra.mxu0 %v3548_v12 }
  0x4a   : > { %3132 = vmatprep.subr.bf16.mxu0 %v3553_v6 }
  0x4b   : > { %3123 = vmatpush3.bf16.msra.mxu1 %v3560_v19 }
  0x4c   : > { %3101 = vmatmul.mubr.bf16.vlgmr.msra.gmra.mxu0 %v3550_v14  ;;  %3156 = vmatprep.subr.bf16.mxu1 %v3561_v57 }
  0x4d   : > { %3104 = vmatprep.mubr.bf16.mxu0 %v3551_v15  ;;  %3133 = vmatpush3.bf16.msra.mxu0 %v3553_v6 }
  0x4e   : > { %3134 = vmatprep.subr.bf16.mxu0 %v3554_v7 }
  0x51   : > { %3135 = vmatpush3.bf16.msra.mxu0 %v3554_v7 }
  0x52   : > { %3136 = vmatprep.subr.bf16.mxu0 %v3555_v9 }
  0x54   : > { %3105 = vmatmul.mubr.bf16.gmra.mxu0 %v3552_v16 }
  0x55   : > { %3137 = vmatpush3.bf16.msra.mxu0 %v3555_v9 }
  0x56   : > { %3138 = vmatprep.subr.bf16.mxu0 %v3556_v11 }
  0x59   : > { %3139 = vmatpush3.bf16.msra.mxu0 %v3556_v11 }
  0x5a   : > { %3140 = vmatprep.subr.bf16.mxu0 %v3557_v13 }
  0x5d   : > { %3141 = vmatpush3.bf16.msra.mxu0 %v3557_v13 }
  0x5e   : > { %3142 = vmatprep.subr.bf16.mxu0 %v3558_v17 }
  0x61   : > { %3143 = vmatpush3.bf16.msra.mxu0 %v3558_v17 }
  0x62   : > { %3144 = vmatprep.subr.bf16.mxu0 %v3559_v18 }
  0x65   : > { %3145 = vmatpush3.bf16.msra.mxu0 %v3559_v18 }
  0x66   : > { %3146 = vmatprep.subr.bf16.mxu0 %v3560_v19 }
  0x69   : > { %3147 = vmatpush3.bf16.msra.mxu0 %v3560_v19 }
  0x6a   : > { %3180 = vmatprep.subr.bf16.mxu0 %v3569_v1 }
 0x10c   : > { %v3102_v24 = vpop.f32.mrf.mxu0 }
 0x10d   : > { %v3881_v30 = vadd.f32 %v3102_v24, %v304_v25 }
 0x10e   : > { %v411_v26 = vpop.f32.mrf.mxu0 }
 0x10f   : > { %v3877_v28 = vadd.f32 %v411_v26, %v304_v25  ;;  %v561_v38 = vmul.f32 %v3881_v30, %v3881_v30 }
 0x110   : > { %v3103_v27 = vpop.f32.mrf.mxu0 }
 0x111   : > { %v3879_v29 = vadd.f32 %v3103_v27, %v304_v25  ;;  %v559_v35 = vmul.f32 %v3877_v28, %v3877_v28 }
 0x112   : > { %v414_v31 = vpop.f32.mrf.mxu0 }
 0x113   : > { %v3883_v32 = vadd.f32 %v414_v31, %v304_v25  ;;  %v562_v33 = vmul.f32 %v3879_v29, %v3879_v29  ;;  %v443_v40 = vpack.c.bf16 %v3879_v29, %v3881_v30 }
 0x114   : > { %v3106_v34 = vpop.f32.mrf.mxu0 }
 0x115   : > { %v560_v36 = vmul.f32 %v3883_v32, %v3883_v32  ;;  %v442_v37 = vpack.c.bf16 %v3883_v32, %v3877_v28  ;;  %v568_v42 = vpack.c.bf16 %v562_v33, %v561_v38  ;;  %v3901_v46 = vadd.f32 %v3106_v34, %v304_v25 }
 0x116   : > { %v427_v39 = vpop.f32.mrf.mxu0 }
 0x117   : > { %3124 = vmatprep.mubr.bf16.mxu1 %v442_v37  ;;  %v567_v41 = vpack.c.bf16 %v560_v36, %v559_v35  ;;  %v3897_v44 = vadd.f32 %v427_v39, %v304_v25  ;;  %v565_v53 = vmul.f32 %v3901_v46, %v3901_v46 }
 0x118   : > { %v3107_v43 = vpop.f32.mrf.mxu0  ;;  %3125 = vmatmul.mubr.bf16.vlgmr.msra.gmra.mxu1 %v443_v40 }
 0x119   : > { %v3899_v45 = vadd.f32 %v3107_v43, %v304_v25  ;;  %3148 = vmatprep.mubr.bf16.mxu0 %v567_v41  ;;  %v563_v50 = vmul.f32 %v3897_v44, %v3897_v44  ;;  %3157 = vmatpush3.bf16.msra.mxu1 %v3561_v57  ;;  %v686_v57 = vsub.s32 1, %v3869_v21 }
 0x11a   : > { %v430_v47 = vpop.f32.mrf.mxu0  ;;  %3149 = vmatmul.mubr.bf16.vlgmr.msra.gmra.mxu0 %v568_v42  ;;  %3158 = vmatprep.subr.bf16.mxu1 %v3562_v58 }
 0x11b   : > { %v3903_v48 = vadd.f32 %v430_v47, %v304_v25  ;;  %v566_v49 = vmul.f32 %v3899_v45, %v3899_v45  ;;  %v445_v54 = vpack.c.bf16 %v3899_v45, %v3901_v46  ;;  %3181 = vmatpush3.bf16.msra.mxu0 %v3569_v1  ;;  %v687_v1 = vrot.slane %v3872_v23, %v686_v57 }
 0x11c   : > { %3182 = vmatprep.subr.bf16.mxu0 %v3570_v2 }
 0x11d   : > { %v564_v51 = vmul.f32 %v3903_v48, %v3903_v48  ;;  %v444_v52 = vpack.c.bf16 %v3903_v48, %v3897_v44  ;;  %v570_v56 = vpack.c.bf16 %v566_v49, %v565_v53  ;;  %3159 = vmatpush3.bf16.msra.mxu1 %v3562_v58 }
 0x11e   : > { %3160 = vmatprep.subr.bf16.mxu1 %v3563_v59 }
 0x11f   : > { %3128 = vmatprep.mubr.bf16.mxu1 %v444_v52  ;;  %v569_v55 = vpack.c.bf16 %v564_v51, %v563_v50  ;;  %3183 = vmatpush3.bf16.msra.mxu0 %v3570_v2  ;;  %v698_v2 = vsub.s32 2, %v3869_v21 }
 0x120   : > { %3129 = vmatmul.mubr.bf16.gmra.mxu1 %v445_v54  ;;  %3184 = vmatprep.subr.bf16.mxu0 %v3571_v3 }
 0x121   : > { %3152 = vmatprep.mubr.bf16.mxu0 %v569_v55  ;;  %3161 = vmatpush3.bf16.msra.mxu1 %v3563_v59 }
 0x122   : > { %3153 = vmatmul.mubr.bf16.gmra.mxu0 %v570_v56  ;;  %3162 = vmatprep.subr.bf16.mxu1 %v3564_v60 }
 0x123   : > { %3185 = vmatpush3.bf16.msra.mxu0 %v3571_v3 }
 0x124   : > { %3186 = vmatprep.subr.bf16.mxu0 %v3572_v4 }
 0x125   : > { %3163 = vmatpush3.bf16.msra.mxu1 %v3564_v60 }
 0x126   : > { %3164 = vmatprep.subr.bf16.mxu1 %v3565_v61 }
 0x127   : > { %3187 = vmatpush3.bf16.msra.mxu0 %v3572_v4 }
 0x128   : > { %3188 = vmatprep.subr.bf16.mxu0 %v3573_v5 }
 0x129   : > { %3165 = vmatpush3.bf16.msra.mxu1 %v3565_v61 }
 0x12a   : > { %3166 = vmatprep.subr.bf16.mxu1 %v3566_v62 }
 0x12b   : > { %3189 = vmatpush3.bf16.msra.mxu0 %v3573_v5 }
 0x12d   : > { %3167 = vmatpush3.bf16.msra.mxu1 %v3566_v62 }
 0x12e   : > { %3168 = vmatprep.subr.bf16.mxu1 %v3567_v63 }
 0x131   : > { %3169 = vmatpush3.bf16.msra.mxu1 %v3567_v63 }
 0x132   : > { %3170 = vmatprep.subr.bf16.mxu1 %v3568_v0 }
 0x135   : > { %3171 = vmatpush3.bf16.msra.mxu1 %v3568_v0 }
 0x1d8   : > { %v3126_v6 = vpop.f32.mrf.mxu1 }
 0x1d9   : > { %v638_v7 = vmul.f32 %v3126_v6, %v3126_v6  ;;  %v670_v61 = vsub.f32 %v3881_v30, %v3126_v6  ;;  %v699_v30 = vrot.slane %v3872_v23, %v698_v2 }
 0x1da   : > { %v528_v8 = vpop.f32.mrf.mxu1  ;;  %v3150_v9 = vpop.f32.mrf.mxu0 }
 0x1db   : > { %v636_v10 = vmul.f32 %v528_v8, %v528_v8  ;;  %v646_v11 = vsub.f32 %v3150_v9, %v638_v7  ;;  %v668_v59 = vsub.f32 %v3877_v28, %v528_v8 }
 0x1dc   : > { %v3127_v12 = vpop.f32.mrf.mxu1  ;;  %v605_v13 = vpop.f32.mrf.mxu0 }
 0x1dd   : > { %v654_v14 = vadd.f32 1e-05, %v646_v11  ;;  %v639_v15 = vmul.f32 %v3127_v12, %v3127_v12  ;;  %v644_v16 = vsub.f32 %v605_v13, %v636_v10  ;;  %v671_v0 = vsub.f32 %v3879_v29, %v3127_v12 }
 0x1de   : > { %v531_v17 = vpop.f32.mrf.mxu1  ;;  %v3151_v18 = vpop.f32.mrf.mxu0 }
 0x1df   : > { %v652_v19 = vadd.f32 1e-05, %v644_v16  ;;  %v637_v20 = vmul.f32 %v531_v17, %v531_v17  ;;  %3657 = vrsqrt.f32 %v654_v14  ;;  %v647_v24 = vsub.f32 %v3151_v18, %v639_v15 }
 0x1e0   : > { %v3917_v25 = vpop.f32.mrf.mxu1  ;;  %v608_v26 = vpop.f32.mrf.mxu0  ;;  %v669_v4 = vsub.f32 %v3883_v32, %v531_v17 }
 0x1e1   : > { %3659 = vrsqrt.f32 %v652_v19  ;;  %v642_v27 = vmul.f32 %v3917_v25, %v3917_v25  ;;  %v645_v31 = vsub.f32 %v608_v26, %v637_v20  ;;  %v655_v33 = vadd.f32 1e-05, %v647_v24 }
 0x1e2   : > { %v544_v34 = vpop.f32.mrf.mxu1  ;;  %v3154_v35 = vpop.f32.mrf.mxu0  ;;  %v674_v11 = vsub.f32 %v3901_v46, %v3917_v25 }
 0x1e3   : > { %v653_v36 = vadd.f32 1e-05, %v645_v31  ;;  %v640_v37 = vmul.f32 %v544_v34, %v544_v34  ;;  %v650_v38 = vsub.f32 %v3154_v35, %v642_v27  ;;  %3661 = vrsqrt.f32 %v655_v33 }
 0x1e4   : > { %v3131_v39 = vpop.f32.mrf.mxu1  ;;  %v621_v40 = vpop.f32.mrf.mxu0  ;;  %v672_v12 = vsub.f32 %v3897_v44, %v544_v34 }
 0x1e5   : > { %3663 = vrsqrt.f32 %v653_v36  ;;  %v658_v41 = vadd.f32 1e-05, %v650_v38  ;;  %v643_v42 = vmul.f32 %v3131_v39, %v3131_v39  ;;  %v648_v43 = vsub.f32 %v621_v40, %v640_v37  ;;  %v3574_v40 = vld [vmem:[#allocation2 + $0x90] sm:$0xff]  }
 0x1e6   : > { %v547_v47 = vpop.f32.mrf.mxu1  ;;  %v3155_v49 = vpop.f32.mrf.mxu0  ;;  %v675_v14 = vsub.f32 %v3899_v45, %v3131_v39  ;;  %3190 = vmatprep.subr.bf16.mxu0 %v3574_v40 }
 0x1e7   : > { %v641_v50 = vmul.f32 %v547_v47, %v547_v47  ;;  %v651_v51 = vsub.f32 %v3155_v49, %v643_v42  ;;  %3665 = vrsqrt.f32 %v658_v41  ;;  %v656_v52 = vadd.f32 1e-05, %v648_v43  ;;  %3191 = vmatpush3.bf16.msra.mxu0 %v3574_v40  ;;  %v3575_v41 = vld [vmem:[#allocation2 + $0x88] sm:$0xff]   ;;  %v3576_v42 = vld [vmem:[#allocation2 + $0x80] sm:$0xff]   ;;  %v3577_v43 = vld [vmem:[#allocation2 + $0xf8] sm:$0xff]  }
 0x1e8   : > { %v624_v53 = vpop.f32.mrf.mxu0  ;;  %v673_v24 = vsub.f32 %v3903_v48, %v547_v47  ;;  %3192 = vmatprep.subr.bf16.mxu0 %v3575_v41  ;;  %v3578_v47 = vld [vmem:[#allocation2 + $0xf0] sm:$0xff]   ;;  %3204 = vmatprep.subr.bf16.mxu1 %v3577_v43  ;;  %v3579_v49 = vld [vmem:[#allocation2 + $0xe8] sm:$0xff]  }
 0x1e9   : > { %v659_v54 = vadd.f32 1e-05, %v651_v51  ;;  %v649_v55 = vsub.f32 %v624_v53, %v641_v50  ;;  %3667 = vrsqrt.f32 %v656_v52  ;;  %v3580_v50 = vld [vmem:[#allocation2 + $0xe0] sm:$0xff]   ;;  %v3581_v51 = vld [vmem:[#allocation2 + $0xd8] sm:$0xff]   ;;  %v730_v52 = vsub.s32 3, %v3869_v21 }
 0x1eb   : > { %3669 = vrsqrt.f32 %v659_v54  ;;  %v657_v56 = vadd.f32 1e-05, %v649_v55  ;;  %3193 = vmatpush3.bf16.msra.mxu0 %v3575_v41  ;;  %v731_v54 = vrot.slane %v3872_v23, %v730_v52 }
 0x1ec   : > { %v3658_v58 = vpop.eup %3657  ;;  %3194 = vmatprep.subr.bf16.mxu0 %v3576_v42 }
 0x1ed   : > { %3671 = vrsqrt.f32 %v657_v56  ;;  %v678_v63 = vmul.f32 %v3658_v58, %v670_v61 }
 0x1ee   : > { %v3660_v60 = vpop.eup %3659 }
 0x1ef   : > { %v676_v62 = vmul.f32 %v3660_v60, %v668_v59  ;;  %v690_v6 = vmul.f32 %v687_v1, %v678_v63  ;;  %3195 = vmatpush3.bf16.msra.mxu0 %v3576_v42 }
 0x1f0   : > { %v3662_v3 = vpop.eup %3661 }
 0x1f1   : > { %v679_v7 = vmul.f32 %v3662_v3, %v671_v0  ;;  %v688_v8 = vmul.f32 %v687_v1, %v676_v62  ;;  %v3943_v18 = vadd.f32 %v699_v30, %v690_v6 }
 0x1f2   : > { %v3664_v5 = vpop.eup %3663 }
 0x1f3   : > { %v677_v28 = vmul.f32 %v3664_v5, %v669_v4  ;;  %v691_v9 = vmul.f32 %v687_v1, %v679_v7  ;;  %v3939_v15 = vadd.f32 %v699_v30, %v688_v8 }
 0x1f4   : > { %v3666_v29 = vpop.eup %3665 }
 0x1f5   : > { %v689_v10 = vmul.f32 %v687_v1, %v677_v28  ;;  %v3936_v13 = vadd.f32 %v699_v30, %v691_v9  ;;  %v682_v20 = vmul.f32 %v3666_v29, %v674_v11 }
 0x1f6   : > { %v3668_v32 = vpop.eup %3667 }
 0x1f7   : > { %v3941_v16 = vadd.f32 %v699_v30, %v689_v10  ;;  %v680_v19 = vmul.f32 %v3668_v32, %v672_v12  ;;  %v709_v26 = vpack.c.bf16 %v3936_v13, %v3943_v18  ;;  %v694_v33 = vmul.f32 %v687_v1, %v682_v20  ;;  %v3582_v20 = vld [vmem:[#allocation2 + $0xd0] sm:$0xff]  }
 0x1f8   : > { %v3670_v17 = vpop.eup %3669 }
 0x1f9   : > { %v708_v46 = vpack.c.bf16 %v3941_v16, %v3939_v15  ;;  %v683_v44 = vmul.f32 %v3670_v17, %v675_v14  ;;  %v692_v27 = vmul.f32 %v687_v1, %v680_v19  ;;  %v3956_v37 = vadd.f32 %v699_v30, %v694_v33 }
 0x1fa   : > { %v3672_v25 = vpop.eup %3671 }
 0x1fb   : > { %3172 = vmatprep.mubr.bf16.mxu1 %v708_v46  ;;  %v681_v45 = vmul.f32 %v3672_v25, %v673_v24  ;;  %v695_v31 = vmul.f32 %v687_v1, %v683_v44  ;;  %v3952_v36 = vadd.f32 %v699_v30, %v692_v27  ;;  %v3583_v24 = vld [vmem:[#allocation2 + $0xc8] sm:$0xff]   ;;  %v3584_v46 = vld [vmem:[#allocation2 + $0xc0] sm:$0xff]   ;;  %v3585_v44 = vld [vmem:[#allocation2 + $0x138] sm:$0xff]  }
 0x1fc   : > { %3173 = vmatmul.mubr.bf16.vlgmr.msra.gmra.mxu1 %v709_v26  ;;  %v3586_v25 = vld [vmem:[#allocation2 + $0x130] sm:$0xff]   ;;  %3228 = vmatprep.subr.bf16.mxu0 %v3585_v44  ;;  %v3587_v26 = vld [vmem:[#allocation2 + $0x128] sm:$0xff]   ;;  %v3589_v27 = vld [vmem:[#allocation2 + $0x118] sm:$0xff]  }
 0x1fd   : > { %v693_v34 = vmul.f32 %v687_v1, %v681_v45  ;;  %v3950_v35 = vadd.f32 %v699_v30, %v695_v31  ;;  %3205 = vmatpush3.bf16.msra.mxu1 %v3577_v43  ;;  %v3588_v45 = vld [vmem:[#allocation2 + $0x120] sm:$0xff]   ;;  %v875_v31 = vsub.s32 4, %v3869_v21 }
 0x1fe   : > { %3206 = vmatprep.subr.bf16.mxu1 %v3578_v47 }
 0x1ff   : > { %v3954_v48 = vadd.f32 %v699_v30, %v693_v34  ;;  %v711_v39 = vpack.c.bf16 %v3950_v35, %v3956_v37  ;;  %v876_v34 = vrot.slane %v3872_v23, %v875_v31 }
 0x201   : > { %v710_v38 = vpack.c.bf16 %v3954_v48, %v3952_v36  ;;  %3207 = vmatpush3.bf16.msra.mxu1 %v3578_v47 }
 0x202   : > { %3208 = vmatprep.subr.bf16.mxu1 %v3579_v49 }
 0x203   : > { %3176 = vmatprep.mubr.bf16.mxu1 %v710_v38 }
 0x204   : > { %3177 = vmatmul.mubr.bf16.gmra.mxu1 %v711_v39 }
 0x205   : > { %3209 = vmatpush3.bf16.msra.mxu1 %v3579_v49 }
 0x206   : > { %3210 = vmatprep.subr.bf16.mxu1 %v3580_v50 }
 0x209   : > { %3211 = vmatpush3.bf16.msra.mxu1 %v3580_v50 }
 0x20a   : > { %3212 = vmatprep.subr.bf16.mxu1 %v3581_v51 }
 0x20d   : > { %3213 = vmatpush3.bf16.msra.mxu1 %v3581_v51 }
 0x20e   : > { %3214 = vmatprep.subr.bf16.mxu1 %v3582_v20 }
 0x211   : > { %3215 = vmatpush3.bf16.msra.mxu1 %v3582_v20 }
 0x212   : > { %3216 = vmatprep.subr.bf16.mxu1 %v3583_v24 }
 0x215   : > { %3217 = vmatpush3.bf16.msra.mxu1 %v3583_v24 }
 0x216   : > { %3218 = vmatprep.subr.bf16.mxu1 %v3584_v46 }
 0x219   : > { %3219 = vmatpush3.bf16.msra.mxu1 %v3584_v46 }
 0x2bc   : > { %v3174_v53 = vpop.f32.mrf.mxu1 }
 0x2bd   : > { %v823_v60 = vadd.f32 %v3174_v53, %v731_v54 }
 0x2be   : > { %v814_v55 = vpop.f32.mrf.mxu1 }
 0x2bf   : > { %v815_v58 = vadd.f32 %v814_v55, %v731_v54  ;;  %v847_v4 = vmax.f32 %v823_v60, 0.0 }
 0x2c0   : > { %v3175_v56 = vpop.f32.mrf.mxu1 }
 0x2c1   : > { %v826_v59 = vadd.f32 %v3175_v56, %v731_v54  ;;  %v845_v1 = vmax.f32 %v815_v58, 0.0 }
 0x2c2   : > { %v817_v61 = vpop.f32.mrf.mxu1 }
 0x2c3   : > { %v818_v62 = vadd.f32 %v817_v61, %v731_v54  ;;  %v848_v63 = vmax.f32 %v826_v59, 0.0 }
 0x2c4   : > { %v3178_v0 = vpop.f32.mrf.mxu1 }
 0x2c5   : > { %v846_v3 = vmax.f32 %v818_v62, 0.0  ;;  %v854_v28 = vpack.c.bf16 %v848_v63, %v847_v4  ;;  %v839_v9 = vadd.f32 %v3178_v0, %v731_v54 }
 0x2c6   : > { %v830_v5 = vpop.f32.mrf.mxu1 }
 0x2c7   : > { %v853_v7 = vpack.c.bf16 %v846_v3, %v845_v1  ;;  %v831_v30 = vadd.f32 %v830_v5, %v731_v54  ;;  %v851_v14 = vmax.f32 %v839_v9, 0.0  ;;  %v3593_v9 = vld [vmem:[#allocation2 + $0x178] sm:$0xff]  }
 0x2c8   : > { %v3179_v8 = vpop.f32.mrf.mxu1  ;;  %3252 = vmatprep.subr.bf16.mxu1 %v3593_v9 }
 0x2c9   : > { %v842_v6 = vadd.f32 %v3179_v8, %v731_v54  ;;  %3196 = vmatprep.mubr.bf16.mxu0 %v853_v7  ;;  %v849_v12 = vmax.f32 %v831_v30, 0.0  ;;  %v3590_v8 = vld [vmem:[#allocation2 + $0x110] sm:$0xff]   ;;  %v3591_v30 = vld [vmem:[#allocation2 + $0x108] sm:$0xff]  }
 0x2ca   : > { %v833_v29 = vpop.f32.mrf.mxu1  ;;  %3197 = vmatmul.mubr.bf16.vlgmr.msra.gmra.mxu0 %v854_v28 }
 0x2cb   : > { %v834_v10 = vadd.f32 %v833_v29, %v731_v54  ;;  %v852_v11 = vmax.f32 %v842_v6, 0.0  ;;  %3229 = vmatpush3.bf16.msra.mxu0 %v3585_v44  ;;  %v3592_v6 = vld [vmem:[#allocation2 + $0x100] sm:$0xff]   ;;  %v3594_v29 = vld [vmem:[#allocation2 + $0x170] sm:$0xff]  }
 0x2cc   : > { %3230 = vmatprep.subr.bf16.mxu0 %v3586_v25 }
 0x2cd   : > { %v850_v32 = vmax.f32 %v834_v10, 0.0  ;;  %v856_v19 = vpack.c.bf16 %v852_v11, %v851_v14  ;;  %v3595_v10 = vld [vmem:[#allocation2 + $0x168] sm:$0xff]   ;;  %v3596_v11 = vld [vmem:[#allocation2 + $0x160] sm:$0xff]  }
 0x2cf   : > { %v855_v17 = vpack.c.bf16 %v850_v32, %v849_v12  ;;  %3231 = vmatpush3.bf16.msra.mxu0 %v3586_v25  ;;  %v3597_v12 = vld [vmem:[#allocation2 + $0x158] sm:$0xff]   ;;  %v1020_v32 = vsub.s32 5, %v3869_v21 }
 0x2d0   : > { %3232 = vmatprep.subr.bf16.mxu0 %v3587_v26 }
 0x2d1   : > { %3200 = vmatprep.mubr.bf16.mxu0 %v855_v17  ;;  %v1021_v17 = vrot.slane %v3872_v23, %v1020_v32 }
 0x2d2   : > { %3201 = vmatmul.mubr.bf16.gmra.mxu0 %v856_v19 }
 0x2d3   : > { %3233 = vmatpush3.bf16.msra.mxu0 %v3587_v26 }
 0x2d4   : > { %3234 = vmatprep.subr.bf16.mxu0 %v3588_v45 }
 0x2d7   : > { %3235 = vmatpush3.bf16.msra.mxu0 %v3588_v45 }
 0x2d8   : > { %3236 = vmatprep.subr.bf16.mxu0 %v3589_v27 }
 0x2db   : > { %3237 = vmatpush3.bf16.msra.mxu0 %v3589_v27 }
 0x2dc   : > { %3238 = vmatprep.subr.bf16.mxu0 %v3590_v8 }
 0x2df   : > { %3239 = vmatpush3.bf16.msra.mxu0 %v3590_v8 }
 0x2e0   : > { %3240 = vmatprep.subr.bf16.mxu0 %v3591_v30 }
 0x2e3   : > { %3241 = vmatpush3.bf16.msra.mxu0 %v3591_v30 }
 0x2e4   : > { %3242 = vmatprep.subr.bf16.mxu0 %v3592_v6 }
 0x2e7   : > { %3243 = vmatpush3.bf16.msra.mxu0 %v3592_v6 }
 0x38a   : > { %v3198_v33 = vpop.f32.mrf.mxu0 }
 0x38b   : > { %v968_v42 = vadd.f32 %v3198_v33, %v876_v34 }
 0x38c   : > { %v959_v38 = vpop.f32.mrf.mxu0 }
 0x38d   : > { %v960_v40 = vadd.f32 %v959_v38, %v876_v34  ;;  %v992_v54 = vmax.f32 %v968_v42, 0.0 }
 0x38e   : > { %v3199_v39 = vpop.f32.mrf.mxu0 }
 0x38f   : > { %v971_v41 = vadd.f32 %v3199_v39, %v876_v34  ;;  %v990_v51 = vmax.f32 %v960_v40, 0.0 }
 0x390   : > { %v962_v43 = vpop.f32.mrf.mxu0 }
 0x391   : > { %v963_v47 = vadd.f32 %v962_v43, %v876_v34  ;;  %v993_v49 = vmax.f32 %v971_v41, 0.0 }
 0x392   : > { %v3202_v50 = vpop.f32.mrf.mxu0 }
 0x393   : > { %v991_v53 = vmax.f32 %v963_v47, 0.0  ;;  %v999_v58 = vpack.c.bf16 %v993_v49, %v992_v54  ;;  %v984_v62 = vadd.f32 %v3202_v50, %v876_v34 }
 0x394   : > { %v975_v55 = vpop.f32.mrf.mxu0 }
 0x395   : > { %v998_v56 = vpack.c.bf16 %v991_v53, %v990_v51  ;;  %v976_v60 = vadd.f32 %v975_v55, %v876_v34  ;;  %v996_v5 = vmax.f32 %v984_v62, 0.0  ;;  %v3600_v62 = vld [vmem:[#allocation2 + $0x140] sm:$0xff]  }
 0x396   : > { %v3203_v59 = vpop.f32.mrf.mxu0 }
 0x397   : > { %v987_v61 = vadd.f32 %v3203_v59, %v876_v34  ;;  %3220 = vmatprep.mubr.bf16.mxu1 %v998_v56  ;;  %v994_v3 = vmax.f32 %v976_v60, 0.0  ;;  %v3598_v60 = vld [vmem:[#allocation2 + $0x150] sm:$0xff]  }
 0x398   : > { %v978_v63 = vpop.f32.mrf.mxu0  ;;  %3221 = vmatmul.mubr.bf16.vlgmr.msra.gmra.mxu1 %v999_v58 }
 0x399   : > { %v979_v0 = vadd.f32 %v978_v63, %v876_v34  ;;  %v997_v1 = vmax.f32 %v987_v61, 0.0  ;;  %3253 = vmatpush3.bf16.msra.mxu1 %v3593_v9  ;;  %v3599_v61 = vld [vmem:[#allocation2 + $0x148] sm:$0xff]   ;;  %v3601_v63 = vld [vmem:[#allocation2 + $0x1b8] sm:$0xff]  }
 0x39a   : > { %3254 = vmatprep.subr.bf16.mxu1 %v3594_v29  ;;  %3276 = vmatprep.subr.bf16.mxu0 %v3601_v63 }
 0x39b   : > { %v995_v4 = vmax.f32 %v979_v0, 0.0  ;;  %v1001_v28 = vpack.c.bf16 %v997_v1, %v996_v5  ;;  %v3602_v0 = vld [vmem:[#allocation2 + $0x1b0] sm:$0xff]   ;;  %v3603_v1 = vld [vmem:[#allocation2 + $0x1a8] sm:$0xff]   ;;  %v1165_v5 = vsub.s32 6, %v3869_v21 }
 0x39d   : > { %v1000_v7 = vpack.c.bf16 %v995_v4, %v994_v3  ;;  %3255 = vmatpush3.bf16.msra.mxu1 %v3594_v29  ;;  %v3604_v3 = vld [vmem:[#allocation2 + $0x1a0] sm:$0xff]   ;;  %v3605_v4 = vld [vmem:[#allocation2 + $0x198] sm:$0xff]  }
 0x39e   : > { %3256 = vmatprep.subr.bf16.mxu1 %v3595_v10 }
 0x39f   : > { %3224 = vmatprep.mubr.bf16.mxu1 %v1000_v7 }
 0x3a0   : > { %3225 = vmatmul.mubr.bf16.gmra.mxu1 %v1001_v28  ;;  %v1166_v28 = vrot.slane %v3872_v23, %v1165_v5 }
 0x3a1   : > { %3257 = vmatpush3.bf16.msra.mxu1 %v3595_v10 }
 0x3a2   : > { %3258 = vmatprep.subr.bf16.mxu1 %v3596_v11 }
 0x3a5   : > { %3259 = vmatpush3.bf16.msra.mxu1 %v3596_v11 }
 0x3a6   : > { %3260 = vmatprep.subr.bf16.mxu1 %v3597_v12 }
 0x3a9   : > { %3261 = vmatpush3.bf16.msra.mxu1 %v3597_v12 }
 0x3aa   : > { %3262 = vmatprep.subr.bf16.mxu1 %v3598_v60 }
 0x3ad   : > { %3263 = vmatpush3.bf16.msra.mxu1 %v3598_v60 }
 0x3ae   : > { %3264 = vmatprep.subr.bf16.mxu1 %v3599_v61 }
 0x3b1   : > { %3265 = vmatpush3.bf16.msra.mxu1 %v3599_v61 }
 0x3b2   : > { %3266 = vmatprep.subr.bf16.mxu1 %v3600_v62 }
 0x3b5   : > { %3267 = vmatpush3.bf16.msra.mxu1 %v3600_v62 }
 0x458   : > { %v3222_v14 = vpop.f32.mrf.mxu1 }
 0x459   : > { %v1113_v44 = vadd.f32 %v3222_v14, %v1021_v17 }
 0x45a   : > { %v1104_v19 = vpop.f32.mrf.mxu1 }
 0x45b   : > { %v1105_v24 = vadd.f32 %v1104_v19, %v1021_v17  ;;  %v1137_v38 = vmax.f32 %v1113_v44, 0.0 }
 0x45c   : > { %v3223_v20 = vpop.f32.mrf.mxu1 }
 0x45d   : > { %v1116_v46 = vadd.f32 %v3223_v20, %v1021_v17  ;;  %v1135_v33 = vmax.f32 %v1105_v24, 0.0 }
 0x45e   : > { %v1107_v25 = vpop.f32.mrf.mxu1 }
 0x45f   : > { %v1108_v26 = vadd.f32 %v1107_v25, %v1021_v17  ;;  %v1138_v45 = vmax.f32 %v1116_v46, 0.0 }
 0x460   : > { %v3226_v27 = vpop.f32.mrf.mxu1 }
 0x461   : > { %v1136_v34 = vmax.f32 %v1108_v26, 0.0  ;;  %v1144_v41 = vpack.c.bf16 %v1138_v45, %v1137_v38  ;;  %v1129_v49 = vadd.f32 %v3226_v27, %v1021_v17 }
 0x462   : > { %v1120_v39 = vpop.f32.mrf.mxu1 }
 0x463   : > { %v1143_v40 = vpack.c.bf16 %v1136_v34, %v1135_v33  ;;  %v1121_v43 = vadd.f32 %v1120_v39, %v1021_v17  ;;  %v1141_v56 = vmax.f32 %v1129_v49, 0.0  ;;  %v3607_v49 = vld [vmem:[#allocation2 + $0x188] sm:$0xff]  }
 0x464   : > { %v3227_v42 = vpop.f32.mrf.mxu1 }
 0x465   : > { %v1132_v47 = vadd.f32 %v3227_v42, %v1021_v17  ;;  %3244 = vmatprep.mubr.bf16.mxu0 %v1143_v40  ;;  %v1139_v54 = vmax.f32 %v1121_v43, 0.0 }
 0x466   : > { %v1123_v50 = vpop.f32.mrf.mxu1  ;;  %3245 = vmatmul.mubr.bf16.vlgmr.msra.gmra.mxu0 %v1144_v41 }
 0x467   : > { %v1124_v51 = vadd.f32 %v1123_v50, %v1021_v17  ;;  %v1142_v53 = vmax.f32 %v1132_v47, 0.0  ;;  %3277 = vmatpush3.bf16.msra.mxu0 %v3601_v63  ;;  %v3606_v47 = vld [vmem:[#allocation2 + $0x190] sm:$0xff]   ;;  %v3608_v50 = vld [vmem:[#allocation2 + $0x180] sm:$0xff]  }
 0x468   : > { %3278 = vmatprep.subr.bf16.mxu0 %v3602_v0 }
 0x469   : > { %v1140_v55 = vmax.f32 %v1124_v51, 0.0  ;;  %v1146_v59 = vpack.c.bf16 %v1142_v53, %v1141_v56  ;;  %v3609_v51 = vld [vmem:[#allocation2 + $0x1f8] sm:$0xff]   ;;  %v3610_v53 = vld [vmem:[#allocation2 + $0x1f0] sm:$0xff]  }
 0x46a   : > { %3300 = vmatprep.subr.bf16.mxu1 %v3609_v51  ;;  %v3613_v56 = vld [vmem:[#allocation2 + $0x1d8] sm:$0xff]  }
 0x46b   : > { %v1145_v58 = vpack.c.bf16 %v1140_v55, %v1139_v54  ;;  %3279 = vmatpush3.bf16.msra.mxu0 %v3602_v0  ;;  %v3611_v54 = vld [vmem:[#allocation2 + $0x1e8] sm:$0xff]   ;;  %v3612_v55 = vld [vmem:[#allocation2 + $0x1e0] sm:$0xff]  }
 0x46c   : > { %3280 = vmatprep.subr.bf16.mxu0 %v3603_v1 }
 0x46d   : > { %3248 = vmatprep.mubr.bf16.mxu0 %v1145_v58  ;;  %v1310_v58 = vsub.s32 7, %v3869_v21 }
 0x46e   : > { %3249 = vmatmul.mubr.bf16.gmra.mxu0 %v1146_v59 }
 0x46f   : > { %3281 = vmatpush3.bf16.msra.mxu0 %v3603_v1  ;;  %v1311_v60 = vrot.slane %v3872_v23, %v1310_v58 }
 0x470   : > { %3282 = vmatprep.subr.bf16.mxu0 %v3604_v3 }
 0x473   : > { %3283 = vmatpush3.bf16.msra.mxu0 %v3604_v3 }
 0x474   : > { %3284 = vmatprep.subr.bf16.mxu0 %v3605_v4 }
 0x477   : > { %3285 = vmatpush3.bf16.msra.mxu0 %v3605_v4 }
 0x478   : > { %3286 = vmatprep.subr.bf16.mxu0 %v3606_v47 }
 0x47b   : > { %3287 = vmatpush3.bf16.msra.mxu0 %v3606_v47 }
 0x47c   : > { %3288 = vmatprep.subr.bf16.mxu0 %v3607_v49 }
 0x47f   : > { %3289 = vmatpush3.bf16.msra.mxu0 %v3607_v49 }
 0x480   : > { %3290 = vmatprep.subr.bf16.mxu0 %v3608_v50 }
 0x483   : > { %3291 = vmatpush3.bf16.msra.mxu0 %v3608_v50 }
 0x526   : > { %v3246_v7 = vpop.f32.mrf.mxu0 }
 0x527   : > { %v1258_v29 = vadd.f32 %v3246_v7, %v1166_v28 }
 0x528   : > { %v1249_v8 = vpop.f32.mrf.mxu0 }
 0x529   : > { %v1250_v6 = vadd.f32 %v1249_v8, %v1166_v28  ;;  %v1282_v20 = vmax.f32 %v1258_v29, 0.0 }
 0x52a   : > { %v3247_v30 = vpop.f32.mrf.mxu0 }
 0x52b   : > { %v1261_v9 = vadd.f32 %v3247_v30, %v1166_v28  ;;  %v1280_v17 = vmax.f32 %v1250_v6, 0.0 }
 0x52c   : > { %v1252_v10 = vpop.f32.mrf.mxu0 }
 0x52d   : > { %v1253_v11 = vadd.f32 %v1252_v10, %v1166_v28  ;;  %v1283_v12 = vmax.f32 %v1261_v9, 0.0 }
 0x52e   : > { %v3250_v14 = vpop.f32.mrf.mxu0 }
 0x52f   : > { %v1281_v19 = vmax.f32 %v1253_v11, 0.0  ;;  %v1289_v44 = vpack.c.bf16 %v1283_v12, %v1282_v20  ;;  %v1274_v27 = vadd.f32 %v3250_v14, %v1166_v28 }
 0x530   : > { %v1265_v24 = vpop.f32.mrf.mxu0 }
 0x531   : > { %v1288_v46 = vpack.c.bf16 %v1281_v19, %v1280_v17  ;;  %v1266_v26 = vadd.f32 %v1265_v24, %v1166_v28  ;;  %v1286_v41 = vmax.f32 %v1274_v27, 0.0  ;;  %v3615_v27 = vld [vmem:[#allocation2 + $0x1c8] sm:$0xff]  }
 0x532   : > { %v3251_v25 = vpop.f32.mrf.mxu0 }
 0x533   : > { %v1277_v45 = vadd.f32 %v3251_v25, %v1166_v28  ;;  %3268 = vmatprep.mubr.bf16.mxu1 %v1288_v46  ;;  %v1284_v39 = vmax.f32 %v1266_v26, 0.0 }
 0x534   : > { %v1268_v33 = vpop.f32.mrf.mxu0  ;;  %3269 = vmatmul.mubr.bf16.vlgmr.msra.gmra.mxu1 %v1289_v44 }
 0x535   : > { %v1269_v34 = vadd.f32 %v1268_v33, %v1166_v28  ;;  %v1287_v38 = vmax.f32 %v1277_v45, 0.0  ;;  %3301 = vmatpush3.bf16.msra.mxu1 %v3609_v51  ;;  %v3614_v45 = vld [vmem:[#allocation2 + $0x1d0] sm:$0xff]   ;;  %v3616_v33 = vld [vmem:[#allocation2 + $0x1c0] sm:$0xff]  }
 0x536   : > { %3302 = vmatprep.subr.bf16.mxu1 %v3610_v53 }
 0x537   : > { %v1285_v40 = vmax.f32 %v1269_v34, 0.0  ;;  %v1291_v43 = vpack.c.bf16 %v1287_v38, %v1286_v41  ;;  %v3617_v34 = vld [vmem:[#allocation2 + $0x238] sm:$0xff]   ;;  %v3618_v38 = vld [vmem:[#allocation2 + $0x230] sm:$0xff]  }
 0x538   : > { %3324 = vmatprep.subr.bf16.mxu0 %v3617_v34  ;;  %v3621_v41 = vld [vmem:[#allocation2 + $0x218] sm:$0xff]  }
 0x539   : > { %v1290_v42 = vpack.c.bf16 %v1285_v40, %v1284_v39  ;;  %3303 = vmatpush3.bf16.msra.mxu1 %v3610_v53  ;;  %v3619_v39 = vld [vmem:[#allocation2 + $0x228] sm:$0xff]   ;;  %v3620_v40 = vld [vmem:[#allocation2 + $0x220] sm:$0xff]  }
 0x53a   : > { %3304 = vmatprep.subr.bf16.mxu1 %v3611_v54 }
 0x53b   : > { %3272 = vmatprep.mubr.bf16.mxu1 %v1290_v42  ;;  %v3982_v42 = vld [vmem:[#allocation4 + $0x8] sm:$0xff] }
 0x53c   : > { %3273 = vmatmul.mubr.bf16.gmra.mxu1 %v1291_v43  ;;  %v1456_v47 = vrot.slane %v3982_v42, %v303_v22 }
 0x53d   : > { %3305 = vmatpush3.bf16.msra.mxu1 %v3611_v54 }
 0x53e   : > { %3306 = vmatprep.subr.bf16.mxu1 %v3612_v55 }
 0x541   : > { %3307 = vmatpush3.bf16.msra.mxu1 %v3612_v55 }
 0x542   : > { %3308 = vmatprep.subr.bf16.mxu1 %v3613_v56 }
 0x545   : > { %3309 = vmatpush3.bf16.msra.mxu1 %v3613_v56 }
 0x546   : > { %3310 = vmatprep.subr.bf16.mxu1 %v3614_v45 }
 0x549   : > { %3311 = vmatpush3.bf16.msra.mxu1 %v3614_v45 }
 0x54a   : > { %3312 = vmatprep.subr.bf16.mxu1 %v3615_v27 }
 0x54d   : > { %3313 = vmatpush3.bf16.msra.mxu1 %v3615_v27 }
 0x54e   : > { %3314 = vmatprep.subr.bf16.mxu1 %v3616_v33 }
 0x551   : > { %3315 = vmatpush3.bf16.msra.mxu1 %v3616_v33 }
 0x5f4   : > { %v3270_v59 = vpop.f32.mrf.mxu1 }
 0x5f5   : > { %v1403_v1 = vadd.f32 %v3270_v59, %v1311_v60 }
 0x5f6   : > { %v1394_v61 = vpop.f32.mrf.mxu1 }
 0x5f7   : > { %v1395_v63 = vadd.f32 %v1394_v61, %v1311_v60  ;;  %v1427_v6 = vmax.f32 %v1403_v1, 0.0 }
 0x5f8   : > { %v3271_v62 = vpop.f32.mrf.mxu1 }
 0x5f9   : > { %v1406_v0 = vadd.f32 %v3271_v62, %v1311_v60  ;;  %v1425_v8 = vmax.f32 %v1395_v63, 0.0 }
 0x5fa   : > { %v1397_v3 = vpop.f32.mrf.mxu1 }
 0x5fb   : > { %v1398_v4 = vadd.f32 %v1397_v3, %v1311_v60  ;;  %v1428_v7 = vmax.f32 %v1406_v0, 0.0 }
 0x5fc   : > { %v3274_v28 = vpop.f32.mrf.mxu1 }
 0x5fd   : > { %v1426_v30 = vmax.f32 %v1398_v4, 0.0  ;;  %v1434_v10 = vpack.c.bf16 %v1428_v7, %v1427_v6  ;;  %v1419_v23 = vadd.f32 %v3274_v28, %v1311_v60 }
 0x5fe   : > { %v1410_v9 = vpop.f32.mrf.mxu1 }
 0x5ff   : > { %v1433_v29 = vpack.c.bf16 %v1426_v30, %v1425_v8  ;;  %v1411_v12 = vadd.f32 %v1410_v9, %v1311_v60  ;;  %v1431_v44 = vmax.f32 %v1419_v23, 0.0  ;;  %v3623_v23 = vld [vmem:[#allocation2 + $0x208] sm:$0xff]  }
 0x600   : > { %v3275_v11 = vpop.f32.mrf.mxu1 }
 0x601   : > { %v1422_v14 = vadd.f32 %v3275_v11, %v1311_v60  ;;  %3292 = vmatprep.mubr.bf16.mxu0 %v1433_v29  ;;  %v1429_v24 = vmax.f32 %v1411_v12, 0.0 }
 0x602   : > { %v1413_v17 = vpop.f32.mrf.mxu1  ;;  %3293 = vmatmul.mubr.bf16.vlgmr.msra.gmra.mxu0 %v1434_v10 }
 0x603   : > { %v1414_v19 = vadd.f32 %v1413_v17, %v1311_v60  ;;  %v1432_v20 = vmax.f32 %v1422_v14, 0.0  ;;  %3325 = vmatpush3.bf16.msra.mxu0 %v3617_v34  ;;  %v3622_v14 = vld [vmem:[#allocation2 + $0x210] sm:$0xff]   ;;  %v3624_v17 = vld [vmem:[#allocation2 + $0x200] sm:$0xff]  }
 0x604   : > { %3326 = vmatprep.subr.bf16.mxu0 %v3618_v38 }
 0x605   : > { %v1430_v46 = vmax.f32 %v1414_v19, 0.0  ;;  %v1436_v26 = vpack.c.bf16 %v1432_v20, %v1431_v44  ;;  %v3625_v19 = vld [vmem:[#allocation2 + $0x278] sm:$0xff]   ;;  %v3626_v20 = vld [vmem:[#allocation2 + $0x270] sm:$0xff]  }
 0x606   : > { %3348 = vmatprep.subr.bf16.mxu1 %v3625_v19  ;;  %v3629_v44 = vld [vmem:[#allocation2 + $0x258] sm:$0xff]  }
 0x607   : > { %v1435_v25 = vpack.c.bf16 %v1430_v46, %v1429_v24  ;;  %3327 = vmatpush3.bf16.msra.mxu0 %v3618_v38  ;;  %v3627_v24 = vld [vmem:[#allocation2 + $0x268] sm:$0xff]   ;;  %v3628_v46 = vld [vmem:[#allocation2 + $0x260] sm:$0xff]  }
 0x608   : > { %3328 = vmatprep.subr.bf16.mxu0 %v3619_v39 }
 0x609   : > { %3296 = vmatprep.mubr.bf16.mxu0 %v1435_v25 }
 0x60a   : > { %3297 = vmatmul.mubr.bf16.gmra.mxu0 %v1436_v26  ;;  %v1601_v26 = vrot.slane %v3982_v42, %v686_v57 }
 0x60b   : > { %3329 = vmatpush3.bf16.msra.mxu0 %v3619_v39 }
 0x60c   : > { %3330 = vmatprep.subr.bf16.mxu0 %v3620_v40 }
 0x60f   : > { %3331 = vmatpush3.bf16.msra.mxu0 %v3620_v40 }
 0x610   : > { %3332 = vmatprep.subr.bf16.mxu0 %v3621_v41 }
 0x613   : > { %3333 = vmatpush3.bf16.msra.mxu0 %v3621_v41 }
 0x614   : > { %3334 = vmatprep.subr.bf16.mxu0 %v3622_v14 }
 0x617   : > { %3335 = vmatpush3.bf16.msra.mxu0 %v3622_v14 }
 0x618   : > { %3336 = vmatprep.subr.bf16.mxu0 %v3623_v23 }
 0x61b   : > { %3337 = vmatpush3.bf16.msra.mxu0 %v3623_v23 }
 0x61c   : > { %3338 = vmatprep.subr.bf16.mxu0 %v3624_v17 }
 0x61f   : > { %3339 = vmatpush3.bf16.msra.mxu0 %v3624_v17 }
 0x6c2   : > { %v3294_v43 = vpop.f32.mrf.mxu0 }
 0x6c3   : > { %v1548_v54 = vadd.f32 %v3294_v43, %v1456_v47 }
 0x6c4   : > { %v1539_v49 = vpop.f32.mrf.mxu0 }
 0x6c5   : > { %v1540_v51 = vadd.f32 %v1539_v49, %v1456_v47  ;;  %v1572_v63 = vmax.f32 %v1548_v54, 0.0 }
 0x6c6   : > { %v3295_v50 = vpop.f32.mrf.mxu0 }
 0x6c7   : > { %v1551_v53 = vadd.f32 %v3295_v50, %v1456_v47  ;;  %v1570_v61 = vmax.f32 %v1540_v51, 0.0 }
 0x6c8   : > { %v1542_v55 = vpop.f32.mrf.mxu0 }
 0x6c9   : > { %v1543_v56 = vadd.f32 %v1542_v55, %v1456_v47  ;;  %v1573_v59 = vmax.f32 %v1551_v53, 0.0 }
 0x6ca   : > { %v3298_v60 = vpop.f32.mrf.mxu0 }
 0x6cb   : > { %v1571_v62 = vmax.f32 %v1543_v56, 0.0  ;;  %v1579_v3 = vpack.c.bf16 %v1573_v59, %v1572_v63  ;;  %v1564_v22 = vadd.f32 %v3298_v60, %v1456_v47 }
 0x6cc   : > { %v1555_v0 = vpop.f32.mrf.mxu0 }
 0x6cd   : > { %v1578_v1 = vpack.c.bf16 %v1571_v62, %v1570_v61  ;;  %v1556_v7 = vadd.f32 %v1555_v0, %v1456_v47  ;;  %v1576_v10 = vmax.f32 %v1564_v22, 0.0  ;;  %v3632_v22 = vld [vmem:[#allocation2 + $0x240] sm:$0xff]  }
 0x6ce   : > { %v3299_v4 = vpop.f32.mrf.mxu0 }
 0x6cf   : > { %v1567_v28 = vadd.f32 %v3299_v4, %v1456_v47  ;;  %3316 = vmatprep.mubr.bf16.mxu1 %v1578_v1  ;;  %v1574_v9 = vmax.f32 %v1556_v7, 0.0  ;;  %v3630_v7 = vld [vmem:[#allocation2 + $0x250] sm:$0xff]  }
 0x6d0   : > { %v1558_v8 = vpop.f32.mrf.mxu0  ;;  %3317 = vmatmul.mubr.bf16.vlgmr.msra.gmra.mxu1 %v1579_v3 }
 0x6d1   : > { %v1559_v30 = vadd.f32 %v1558_v8, %v1456_v47  ;;  %v1577_v6 = vmax.f32 %v1567_v28, 0.0  ;;  %3349 = vmatpush3.bf16.msra.mxu1 %v3625_v19  ;;  %v3631_v28 = vld [vmem:[#allocation2 + $0x248] sm:$0xff]   ;;  %v3633_v8 = vld [vmem:[#allocation2 + $0x2b8] sm:$0xff]  }
 0x6d2   : > { %3350 = vmatprep.subr.bf16.mxu1 %v3626_v20  ;;  %3372 = vmatprep.subr.bf16.mxu0 %v3633_v8 }
 0x6d3   : > { %v1575_v29 = vmax.f32 %v1559_v30, 0.0  ;;  %v1581_v12 = vpack.c.bf16 %v1577_v6, %v1576_v10  ;;  %v3634_v30 = vld [vmem:[#allocation2 + $0x2b0] sm:$0xff]   ;;  %v3635_v6 = vld [vmem:[#allocation2 + $0x2a8] sm:$0xff]  }
 0x6d5   : > { %v1580_v11 = vpack.c.bf16 %v1575_v29, %v1574_v9  ;;  %3351 = vmatpush3.bf16.msra.mxu1 %v3626_v20  ;;  %v3636_v9 = vld [vmem:[#allocation2 + $0x2a0] sm:$0xff]   ;;  %v3637_v29 = vld [vmem:[#allocation2 + $0x298] sm:$0xff]  }
 0x6d6   : > { %3352 = vmatprep.subr.bf16.mxu1 %v3627_v24 }
 0x6d7   : > { %3320 = vmatprep.mubr.bf16.mxu1 %v1580_v11  ;;  %v1746_v11 = vrot.slane %v3982_v42, %v698_v2 }
 0x6d8   : > { %3321 = vmatmul.mubr.bf16.gmra.mxu1 %v1581_v12 }
 0x6d9   : > { %3353 = vmatpush3.bf16.msra.mxu1 %v3627_v24 }
 0x6da   : > { %3354 = vmatprep.subr.bf16.mxu1 %v3628_v46 }
 0x6dd   : > { %3355 = vmatpush3.bf16.msra.mxu1 %v3628_v46 }
 0x6de   : > { %3356 = vmatprep.subr.bf16.mxu1 %v3629_v44 }
 0x6e1   : > { %3357 = vmatpush3.bf16.msra.mxu1 %v3629_v44 }
 0x6e2   : > { %3358 = vmatprep.subr.bf16.mxu1 %v3630_v7 }
 0x6e5   : > { %3359 = vmatpush3.bf16.msra.mxu1 %v3630_v7 }
 0x6e6   : > { %3360 = vmatprep.subr.bf16.mxu1 %v3631_v28 }
 0x6e9   : > { %3361 = vmatpush3.bf16.msra.mxu1 %v3631_v28 }
 0x6ea   : > { %3362 = vmatprep.subr.bf16.mxu1 %v3632_v22 }
 0x6ed   : > { %3363 = vmatpush3.bf16.msra.mxu1 %v3632_v22 }
 0x790   : > { %v3318_v25 = vpop.f32.mrf.mxu1 }
 0x791   : > { %v1693_v38 = vadd.f32 %v3318_v25, %v1601_v26 }
 0x792   : > { %v1684_v45 = vpop.f32.mrf.mxu1 }
 0x793   : > { %v1685_v33 = vadd.f32 %v1684_v45, %v1601_v26  ;;  %v1717_v50 = vmax.f32 %v1693_v38, 0.0 }
 0x794   : > { %v3319_v27 = vpop.f32.mrf.mxu1 }
 0x795   : > { %v1696_v34 = vadd.f32 %v3319_v27, %v1601_v26  ;;  %v1715_v47 = vmax.f32 %v1685_v33, 0.0 }
 0x796   : > { %v1687_v39 = vpop.f32.mrf.mxu1 }
 0x797   : > { %v1688_v40 = vadd.f32 %v1687_v39, %v1601_v26  ;;  %v1718_v41 = vmax.f32 %v1696_v34, 0.0 }
 0x798   : > { %v3322_v43 = vpop.f32.mrf.mxu1 }
 0x799   : > { %v1716_v49 = vmax.f32 %v1688_v40, 0.0  ;;  %v1724_v54 = vpack.c.bf16 %v1718_v41, %v1717_v50  ;;  %v1709_v57 = vadd.f32 %v3322_v43, %v1601_v26 }
 0x79a   : > { %v1700_v51 = vpop.f32.mrf.mxu1 }
 0x79b   : > { %v1723_v53 = vpack.c.bf16 %v1716_v49, %v1715_v47  ;;  %v1701_v56 = vadd.f32 %v1700_v51, %v1601_v26  ;;  %v1721_v1 = vmax.f32 %v1709_v57, 0.0  ;;  %v3993_v57 = vld [vmem:[#allocation2 + $0x338] sm:$0xff]  }
 0x79c   : > { %v3323_v55 = vpop.f32.mrf.mxu1 }
 0x79d   : > { %v1712_v59 = vadd.f32 %v3323_v55, %v1601_v26  ;;  %3340 = vmatprep.mubr.bf16.mxu0 %v1723_v53  ;;  %v1719_v63 = vmax.f32 %v1701_v56, 0.0  ;;  %v3638_v55 = vld [vmem:[#allocation2 + $0x290] sm:$0xff]   ;;  %v3639_v56 = vld [vmem:[#allocation2 + $0x288] sm:$0xff]  }
 0x79e   : > { %v1703_v60 = vpop.f32.mrf.mxu1  ;;  %3341 = vmatmul.mubr.bf16.vlgmr.msra.gmra.mxu0 %v1724_v54 }
 0x79f   : > { %v1704_v61 = vadd.f32 %v1703_v60, %v1601_v26  ;;  %v1722_v62 = vmax.f32 %v1712_v59, 0.0  ;;  %3373 = vmatpush3.bf16.msra.mxu0 %v3633_v8  ;;  %v3640_v59 = vld [vmem:[#allocation2 + $0x280] sm:$0xff]   ;;  %v3641_v60 = vld [vmem:[#allocation2 + $0x2f8] sm:$0xff]  }
 0x7a0   : > { %3374 = vmatprep.subr.bf16.mxu0 %v3634_v30  ;;  %3396 = vmatprep.subr.bf16.mxu1 %v3641_v60 }
 0x7a1   : > { %v1720_v0 = vmax.f32 %v1704_v61, 0.0  ;;  %v1726_v4 = vpack.c.bf16 %v1722_v62, %v1721_v1  ;;  %v3642_v61 = vld [vmem:[#allocation2 + $0x2f0] sm:$0xff]   ;;  %v3643_v62 = vld [vmem:[#allocation2 + $0x2e8] sm:$0xff]  }
 0x7a3   : > { %v1725_v3 = vpack.c.bf16 %v1720_v0, %v1719_v63  ;;  %3375 = vmatpush3.bf16.msra.mxu0 %v3634_v30  ;;  %v3644_v63 = vld [vmem:[#allocation2 + $0x2e0] sm:$0xff]   ;;  %v3645_v0 = vld [vmem:[#allocation2 + $0x2d8] sm:$0xff]  }
 0x7a4   : > { %3376 = vmatprep.subr.bf16.mxu0 %v3635_v6 }
 0x7a5   : > { %3344 = vmatprep.mubr.bf16.mxu0 %v1725_v3  ;;  %v1891_v3 = vrot.slane %v3982_v42, %v730_v52 }
 0x7a6   : > { %3345 = vmatmul.mubr.bf16.gmra.mxu0 %v1726_v4 }
 0x7a7   : > { %3377 = vmatpush3.bf16.msra.mxu0 %v3635_v6 }
 0x7a8   : > { %3378 = vmatprep.subr.bf16.mxu0 %v3636_v9 }
 0x7ab   : > { %3379 = vmatpush3.bf16.msra.mxu0 %v3636_v9 }
 0x7ac   : > { %3380 = vmatprep.subr.bf16.mxu0 %v3637_v29 }
 0x7af   : > { %3381 = vmatpush3.bf16.msra.mxu0 %v3637_v29 }
 0x7b0   : > { %3382 = vmatprep.subr.bf16.mxu0 %v3638_v55 }
 0x7b3   : > { %3383 = vmatpush3.bf16.msra.mxu0 %v3638_v55 }
 0x7b4   : > { %3384 = vmatprep.subr.bf16.mxu0 %v3639_v56 }
 0x7b7   : > { %3385 = vmatpush3.bf16.msra.mxu0 %v3639_v56 }
 0x7b8   : > { %3386 = vmatprep.subr.bf16.mxu0 %v3640_v59 }
 0x7bb   : > { %3387 = vmatpush3.bf16.msra.mxu0 %v3640_v59 }
 0x7bc   : > { %3420 = vmatprep.subr.bf16.mxu0 %v3993_v57 }
 0x85e   : > { %v3342_v10 = vpop.f32.mrf.mxu0 }
 0x85f   : > { %v1838_v19 = vadd.f32 %v3342_v10, %v1746_v11 }
 0x860   : > { %v1829_v12 = vpop.f32.mrf.mxu0 }
 0x861   : > { %v1830_v23 = vadd.f32 %v1829_v12, %v1746_v11  ;;  %v1862_v45 = vmax.f32 %v1838_v19, 0.0 }
 0x862   : > { %v3343_v14 = vpop.f32.mrf.mxu0 }
 0x863   : > { %v1841_v17 = vadd.f32 %v3343_v14, %v1746_v11  ;;  %v1860_v25 = vmax.f32 %v1830_v23, 0.0 }
 0x864   : > { %v1832_v20 = vpop.f32.mrf.mxu0 }
 0x865   : > { %v1833_v24 = vadd.f32 %v1832_v20, %v1746_v11  ;;  %v1863_v46 = vmax.f32 %v1841_v17, 0.0 }
 0x866   : > { %v3346_v44 = vpop.f32.mrf.mxu0 }
 0x867   : > { %v1861_v26 = vmax.f32 %v1833_v24, 0.0  ;;  %v1869_v34 = vpack.c.bf16 %v1863_v46, %v1862_v45  ;;  %v1854_v2 = vadd.f32 %v3346_v44, %v1746_v11 }
 0x868   : > { %v1845_v27 = vpop.f32.mrf.mxu0 }
 0x869   : > { %v1868_v33 = vpack.c.bf16 %v1861_v26, %v1860_v25  ;;  %v1846_v39 = vadd.f32 %v1845_v27, %v1746_v11  ;;  %v1866_v51 = vmax.f32 %v1854_v2, 0.0  ;;  %v4000_v26 = vld [vmem:[#allocation2 + $0x330] sm:$0xff]   ;;  %v3693_v2 = vld [vmem:[#allocation2 + $0x318] sm:$0xff]  }
 0x86a   : > { %v3347_v38 = vpop.f32.mrf.mxu0 }
 0x86b   : > { %v1857_v40 = vadd.f32 %v3347_v38, %v1746_v11  ;;  %3364 = vmatprep.mubr.bf16.mxu1 %v1868_v33  ;;  %v1864_v49 = vmax.f32 %v1846_v39, 0.0  ;;  %v4004_v39 = vld [vmem:[#allocation2 + $0x328] sm:$0xff]  }
 0x86c   : > { %v1848_v41 = vpop.f32.mrf.mxu0  ;;  %3365 = vmatmul.mubr.bf16.vlgmr.msra.gmra.mxu1 %v1869_v34 }
 0x86d   : > { %v1849_v43 = vadd.f32 %v1848_v41, %v1746_v11  ;;  %v1867_v47 = vmax.f32 %v1857_v40, 0.0  ;;  %3397 = vmatpush3.bf16.msra.mxu1 %v3641_v60  ;;  %v4008_v40 = vld [vmem:[#allocation2 + $0x320] sm:$0xff]   ;;  %v3694_v41 = vld [vmem:[#allocation2 + $0x310] sm:$0xff]  }
 0x86e   : > { %3398 = vmatprep.subr.bf16.mxu1 %v3642_v61 }
 0x86f   : > { %v1865_v50 = vmax.f32 %v1849_v43, 0.0  ;;  %v1871_v54 = vpack.c.bf16 %v1867_v47, %v1866_v51  ;;  %v3695_v43 = vld [vmem:[#allocation2 + $0x308] sm:$0xff]   ;;  %v3696_v47 = vld [vmem:[#allocation2 + $0x300] sm:$0xff]  }
 0x870   : > { %v3648_v51 = vld [vmem:[#allocation2 + $0x2c0] sm:$0xff]  }
 0x871   : > { %v1870_v53 = vpack.c.bf16 %v1865_v50, %v1864_v49  ;;  %3399 = vmatpush3.bf16.msra.mxu1 %v3642_v61  ;;  %v3646_v49 = vld [vmem:[#allocation2 + $0x2d0] sm:$0xff]   ;;  %v3647_v50 = vld [vmem:[#allocation2 + $0x2c8] sm:$0xff]  }
 0x872   : > { %3400 = vmatprep.subr.bf16.mxu1 %v3643_v62 }
 0x873   : > { %3368 = vmatprep.mubr.bf16.mxu1 %v1870_v53 }
 0x874   : > { %3369 = vmatmul.mubr.bf16.gmra.mxu1 %v1871_v54  ;;  %v2036_v54 = vrot.slane %v3982_v42, %v875_v31 }
 0x875   : > { %3401 = vmatpush3.bf16.msra.mxu1 %v3643_v62 }
 0x876   : > { %3402 = vmatprep.subr.bf16.mxu1 %v3644_v63 }
 0x879   : > { %3403 = vmatpush3.bf16.msra.mxu1 %v3644_v63 }
 0x87a   : > { %3404 = vmatprep.subr.bf16.mxu1 %v3645_v0 }
 0x87d   : > { %3405 = vmatpush3.bf16.msra.mxu1 %v3645_v0 }
 0x87e   : > { %3406 = vmatprep.subr.bf16.mxu1 %v3646_v49 }
 0x881   : > { %3407 = vmatpush3.bf16.msra.mxu1 %v3646_v49 }
 0x882   : > { %3408 = vmatprep.subr.bf16.mxu1 %v3647_v50 }
 0x885   : > { %3409 = vmatpush3.bf16.msra.mxu1 %v3647_v50 }
 0x886   : > { %3410 = vmatprep.subr.bf16.mxu1 %v3648_v51 }
 0x889   : > { %3411 = vmatpush3.bf16.msra.mxu1 %v3648_v51 }
 0x88a   : > { %3444 = vmatprep.subr.bf16.mxu1 %v3993_v57 }
 0x92c   : > { %v3366_v1 = vpop.f32.mrf.mxu1 }
 0x92d   : > { %v1983_v8 = vadd.f32 %v3366_v1, %v1891_v3 }
 0x92e   : > { %v1974_v4 = vpop.f32.mrf.mxu1 }
 0x92f   : > { %v1975_v28 = vadd.f32 %v1974_v4, %v1891_v3  ;;  %v2007_v12 = vmax.f32 %v1983_v8, 0.0 }
 0x930   : > { %v3367_v7 = vpop.f32.mrf.mxu1 }
 0x931   : > { %v1986_v22 = vadd.f32 %v3367_v7, %v1891_v3  ;;  %v2005_v10 = vmax.f32 %v1975_v28, 0.0 }
 0x932   : > { %v1977_v30 = vpop.f32.mrf.mxu1 }
 0x933   : > { %v1978_v6 = vadd.f32 %v1977_v30, %v1891_v3  ;;  %v2008_v9 = vmax.f32 %v1986_v22, 0.0 }
 0x934   : > { %v3370_v29 = vpop.f32.mrf.mxu1 }
 0x935   : > { %v2006_v11 = vmax.f32 %v1978_v6, 0.0  ;;  %v2014_v17 = vpack.c.bf16 %v2008_v9, %v2007_v12  ;;  %v1999_v52 = vadd.f32 %v3370_v29, %v1891_v3 }
 0x936   : > { %v1990_v14 = vpop.f32.mrf.mxu1 }
 0x937   : > { %v2013_v23 = vpack.c.bf16 %v2006_v11, %v2005_v10  ;;  %v1991_v20 = vadd.f32 %v1990_v14, %v1891_v3  ;;  %v2011_v33 = vmax.f32 %v1999_v52, 0.0 }
 0x938   : > { %v3371_v19 = vpop.f32.mrf.mxu1 }
 0x939   : > { %v2002_v24 = vadd.f32 %v3371_v19, %v1891_v3  ;;  %3388 = vmatprep.mubr.bf16.mxu0 %v2013_v23  ;;  %v2009_v45 = vmax.f32 %v1991_v20, 0.0  ;;  %v2181_v20 = vrot.slane %v3982_v42, %v1020_v32 }
 0x93a   : > { %v1993_v46 = vpop.f32.mrf.mxu1  ;;  %3389 = vmatmul.mubr.bf16.vlgmr.msra.gmra.mxu0 %v2014_v17 }
 0x93b   : > { %v1994_v44 = vadd.f32 %v1993_v46, %v1891_v3  ;;  %3421 = vmatpush3.bf16.msra.mxu0 %v3993_v57  ;;  %v2012_v25 = vmax.f32 %v2002_v24, 0.0 }
 0x93c   : > { %3422 = vmatprep.subr.bf16.mxu0 %v4000_v26 }
 0x93d   : > { %v2010_v27 = vmax.f32 %v1994_v44, 0.0  ;;  %v2016_v38 = vpack.c.bf16 %v2012_v25, %v2011_v33 }
 0x93f   : > { %v2015_v34 = vpack.c.bf16 %v2010_v27, %v2009_v45  ;;  %3423 = vmatpush3.bf16.msra.mxu0 %v4000_v26 }
 0x940   : > { %3424 = vmatprep.subr.bf16.mxu0 %v4004_v39 }
 0x941   : > { %3392 = vmatprep.mubr.bf16.mxu0 %v2015_v34 }
 0x942   : > { %3393 = vmatmul.mubr.bf16.gmra.mxu0 %v2016_v38 }
 0x943   : > { %3425 = vmatpush3.bf16.msra.mxu0 %v4004_v39 }
 0x944   : > { %3426 = vmatprep.subr.bf16.mxu0 %v4008_v40 }
 0x947   : > { %3427 = vmatpush3.bf16.msra.mxu0 %v4008_v40 }
 0x948   : > { %3428 = vmatprep.subr.bf16.mxu0 %v3693_v2 }
 0x94b   : > { %3429 = vmatpush3.bf16.msra.mxu0 %v3693_v2 }
 0x94c   : > { %3430 = vmatprep.subr.bf16.mxu0 %v3694_v41 }
 0x94f   : > { %3431 = vmatpush3.bf16.msra.mxu0 %v3694_v41 }
 0x950   : > { %3432 = vmatprep.subr.bf16.mxu0 %v3695_v43 }
 0x953   : > { %3433 = vmatpush3.bf16.msra.mxu0 %v3695_v43 }
 0x954   : > { %3434 = vmatprep.subr.bf16.mxu0 %v3696_v47 }
 0x957   : > { %3435 = vmatpush3.bf16.msra.mxu0 %v3696_v47 }
 0x9fa   : > { %v3390_v53 = vpop.f32.mrf.mxu0 }
 0x9fb   : > { %v2128_v61 = vadd.f32 %v3390_v53, %v2036_v54 }
 0x9fc   : > { %v2119_v55 = vpop.f32.mrf.mxu0 }
 0x9fd   : > { %v2120_v59 = vadd.f32 %v2119_v55, %v2036_v54  ;;  %v2152_v7 = vmax.f32 %v2128_v61, 0.0 }
 0x9fe   : > { %v3391_v56 = vpop.f32.mrf.mxu0 }
 0x9ff   : > { %v2131_v60 = vadd.f32 %v3391_v56, %v2036_v54  ;;  %v2150_v3 = vmax.f32 %v2120_v59, 0.0 }
 0xa00   : > { %v2122_v62 = vpop.f32.mrf.mxu0 }
 0xa01   : > { %v2123_v63 = vadd.f32 %v2122_v62, %v2036_v54  ;;  %v2153_v0 = vmax.f32 %v2131_v60, 0.0 }
 0xa02   : > { %v3394_v1 = vpop.f32.mrf.mxu0 }
 0xa03   : > { %v2151_v4 = vmax.f32 %v2123_v63, 0.0  ;;  %v2159_v8 = vpack.c.bf16 %v2153_v0, %v2152_v7  ;;  %v2144_v31 = vadd.f32 %v3394_v1, %v2036_v54  ;;  %v3649_v1 = vld [vmem:[%s4133_s3 + $0x38] sm:$0xff]   ;;  %v3652_v7 = vld [vmem:[%s4133_s3 + $0x20] sm:$0xff]  }
 0xa04   : > { %v2135_v28 = vpop.f32.mrf.mxu0  ;;  %3468 = vmatprep.subr.bf16.mxu0 %v3649_v1 }
 0xa05   : > { %v2158_v22 = vpack.c.bf16 %v2151_v4, %v2150_v3  ;;  %v2136_v6 = vadd.f32 %v2135_v28, %v2036_v54  ;;  %v2156_v23 = vmax.f32 %v2144_v31, 0.0  ;;  %v3650_v3 = vld [vmem:[%s4133_s3 + $0x30] sm:$0xff]   ;;  %v3651_v4 = vld [vmem:[%s4133_s3 + $0x28] sm:$0xff]   ;;  %v3653_v28 = vld [vmem:[%s4133_s3 + $0x18] sm:$0xff]  }
 0xa06   : > { %v3395_v30 = vpop.f32.mrf.mxu0 }
 0xa07   : > { %v2147_v9 = vadd.f32 %v3395_v30, %v2036_v54  ;;  %3412 = vmatprep.mubr.bf16.mxu1 %v2158_v22  ;;  %v2154_v12 = vmax.f32 %v2136_v6, 0.0  ;;  %v3654_v22 = vld [vmem:[%s4133_s3 + $0x10] sm:$0xff]   ;;  %v3656_v30 = vld [vmem:[%s4133_s3] sm:$0xff]  }
 0xa08   : > { %v2138_v29 = vpop.f32.mrf.mxu0  ;;  %3413 = vmatmul.mubr.bf16.vlgmr.msra.gmra.mxu1 %v2159_v8  ;;  %v3655_v8 = vld [vmem:[%s4133_s3 + $0x8] sm:$0xff]  }
 0xa09   : > { %v2139_v10 = vadd.f32 %v2138_v29, %v2036_v54  ;;  %3445 = vmatpush3.bf16.msra.mxu1 %v3993_v57  ;;  %v2157_v11 = vmax.f32 %v2147_v9, 0.0 }
 0xa0a   : > { %3446 = vmatprep.subr.bf16.mxu1 %v4000_v26 }
 0xa0b   : > { %v2155_v14 = vmax.f32 %v2139_v10, 0.0  ;;  %v2161_v19 = vpack.c.bf16 %v2157_v11, %v2156_v23 }
 0xa0d   : > { %v2160_v17 = vpack.c.bf16 %v2155_v14, %v2154_v12  ;;  %3447 = vmatpush3.bf16.msra.mxu1 %v4000_v26 }
 0xa0e   : > { %3448 = vmatprep.subr.bf16.mxu1 %v4004_v39 }
 0xa0f   : > { %3416 = vmatprep.mubr.bf16.mxu1 %v2160_v17 }
 0xa10   : > { %3417 = vmatmul.mubr.bf16.gmra.mxu1 %v2161_v19 }
 0xa11   : > { %3449 = vmatpush3.bf16.msra.mxu1 %v4004_v39 }
 0xa12   : > { %3450 = vmatprep.subr.bf16.mxu1 %v4008_v40 }
 0xa15   : > { %3451 = vmatpush3.bf16.msra.mxu1 %v4008_v40 }
 0xa16   : > { %3452 = vmatprep.subr.bf16.mxu1 %v3693_v2 }
 0xa19   : > { %3453 = vmatpush3.bf16.msra.mxu1 %v3693_v2 }
 0xa1a   : > { %3454 = vmatprep.subr.bf16.mxu1 %v3694_v41 }
 0xa1d   : > { %3455 = vmatpush3.bf16.msra.mxu1 %v3694_v41 }
 0xa1e   : > { %3456 = vmatprep.subr.bf16.mxu1 %v3695_v43 }
 0xa21   : > { %3457 = vmatpush3.bf16.msra.mxu1 %v3695_v43 }
 0xa22   : > { %3458 = vmatprep.subr.bf16.mxu1 %v3696_v47 }
 0xa25   : > { %3459 = vmatpush3.bf16.msra.mxu1 %v3696_v47 }
 0xa26   : > { %3492 = vmatprep.subr.bf16.mxu1 %v3649_v1 }
 0xac8   : > { %v3414_v57 = vpop.f32.mrf.mxu1 }
 0xac9   : > { %v2273_v44 = vadd.f32 %v3414_v57, %v2181_v20 }
 0xaca   : > { %v2264_v24 = vpop.f32.mrf.mxu1 }
 0xacb   : > { %v2265_v52 = vadd.f32 %v2264_v24, %v2181_v20  ;;  %v4033_v38 = vadd.f32 %v2273_v44, %v3943_v18 }
 0xacc   : > { %v3415_v46 = vpop.f32.mrf.mxu1 }
 0xacd   : > { %v2276_v25 = vadd.f32 %v3415_v46, %v2181_v20  ;;  %v4030_v33 = vadd.f32 %v2265_v52, %v3939_v15 }
 0xace   : > { %v2267_v26 = vpop.f32.mrf.mxu1 }
 0xacf   : > { %v4027_v45 = vadd.f32 %v2276_v25, %v3936_v13  ;;  %v2268_v27 = vadd.f32 %v2267_v26, %v2181_v20  ;;  %v2372_v43 = vmul.f32 %v4030_v33, %v4030_v33 }
 0xad0   : > { %v3418_v34 = vpop.f32.mrf.mxu1 }
 0xad1   : > { %v4036_v39 = vadd.f32 %v2268_v27, %v3941_v16  ;;  %v2375_v40 = vmul.f32 %v4027_v45, %v4027_v45  ;;  %v2304_v41 = vpack.c.bf16 %v4027_v45, %v4033_v38  ;;  %v2374_v16 = vmul.f32 %v4033_v38, %v4033_v38 }
 0xad2   : > { %v2280_v32 = vpop.f32.mrf.mxu1  ;;  %v2289_v47 = vadd.f32 %v3418_v34, %v2181_v20 }
 0xad3   : > { %v2281_v2 = vadd.f32 %v2280_v32, %v2181_v20  ;;  %v2303_v13 = vpack.c.bf16 %v4036_v39, %v4030_v33  ;;  %v2373_v18 = vmul.f32 %v4036_v39, %v4036_v39  ;;  %v2381_v53 = vpack.c.bf16 %v2375_v40, %v2374_v16 }
 0xad4   : > { %v3419_v15 = vpop.f32.mrf.mxu1  ;;  %v4057_v59 = vadd.f32 %v2289_v47, %v3956_v37 }
 0xad5   : > { %v2292_v49 = vadd.f32 %v3419_v15, %v2181_v20  ;;  %3436 = vmatprep.mubr.bf16.mxu0 %v2303_v13  ;;  %v2380_v51 = vpack.c.bf16 %v2373_v18, %v2372_v43  ;;  %v4051_v54 = vadd.f32 %v2281_v2, %v3952_v36 }
 0xad6   : > { %v2283_v50 = vpop.f32.mrf.mxu1  ;;  %3437 = vmatmul.mubr.bf16.vlgmr.msra.gmra.mxu0 %v2304_v41 }
 0xad7   : > { %v4054_v55 = vadd.f32 %v2292_v49, %v3950_v35  ;;  %v2284_v56 = vadd.f32 %v2283_v50, %v2181_v20  ;;  %3460 = vmatprep.mubr.bf16.mxu1 %v2380_v51  ;;  %v2376_v62 = vmul.f32 %v4051_v54, %v4051_v54  ;;  %3469 = vmatpush3.bf16.msra.mxu0 %v3649_v1 }
 0xad8   : > { %3461 = vmatmul.mubr.bf16.vlgmr.msra.gmra.mxu1 %v2381_v53  ;;  %3470 = vmatprep.subr.bf16.mxu0 %v3650_v3 }
 0xad9   : > { %v4060_v60 = vadd.f32 %v2284_v56, %v3954_v48  ;;  %v2379_v35 = vmul.f32 %v4054_v55, %v4054_v55  ;;  %v2306_v37 = vpack.c.bf16 %v4054_v55, %v4057_v59  ;;  %v2378_v48 = vmul.f32 %v4057_v59, %v4057_v59  ;;  %3500 = vmatpush3.bf16.msra.mxu1 %v3649_v1 }
 0xada   : > { %3493 = vmatprep.subr.bf16.mxu1 %v3650_v3 }
 0xadb   : > { %v2305_v61 = vpack.c.bf16 %v4060_v60, %v4051_v54  ;;  %v2377_v36 = vmul.f32 %v4060_v60, %v4060_v60  ;;  %v2383_v0 = vpack.c.bf16 %v2379_v35, %v2378_v48  ;;  %3471 = vmatpush3.bf16.msra.mxu0 %v3650_v3 }
 0xadc   : > { %3472 = vmatprep.subr.bf16.mxu0 %v3651_v4 }
 0xadd   : > { %3440 = vmatprep.mubr.bf16.mxu0 %v2305_v61  ;;  %v2382_v63 = vpack.c.bf16 %v2377_v36, %v2376_v62  ;;  %3501 = vmatpush3.bf16.msra.mxu1 %v3650_v3 }
 0xade   : > { %3441 = vmatmul.mubr.bf16.gmra.mxu0 %v2306_v37  ;;  %3494 = vmatprep.subr.bf16.mxu1 %v3651_v4 }
 0xadf   : > { %3464 = vmatprep.mubr.bf16.mxu1 %v2382_v63  ;;  %3473 = vmatpush3.bf16.msra.mxu0 %v3651_v4 }
 0xae0   : > { %3465 = vmatmul.mubr.bf16.gmra.mxu1 %v2383_v0  ;;  %3474 = vmatprep.subr.bf16.mxu0 %v3652_v7 }
 0xae1   : > { %3502 = vmatpush3.bf16.msra.mxu1 %v3651_v4 }
 0xae2   : > { %3495 = vmatprep.subr.bf16.mxu1 %v3652_v7 }
 0xae3   : > { %3475 = vmatpush3.bf16.msra.mxu0 %v3652_v7 }
 0xae4   : > { %3476 = vmatprep.subr.bf16.mxu0 %v3653_v28 }
 0xae5   : > { %3503 = vmatpush3.bf16.msra.mxu1 %v3652_v7  ;;  %v2500_v7 = vrot.slane %v3982_v42, %v1165_v5 }
 0xae6   : > { %3496 = vmatprep.subr.bf16.mxu1 %v3653_v28 }
 0xae7   : > { %3477 = vmatpush3.bf16.msra.mxu0 %v3653_v28 }
 0xae8   : > { %3478 = vmatprep.subr.bf16.mxu0 %v3654_v22 }
 0xae9   : > { %3504 = vmatpush3.bf16.msra.mxu1 %v3653_v28 }
 0xaea   : > { %3497 = vmatprep.subr.bf16.mxu1 %v3654_v22 }
 0xaeb   : > { %3479 = vmatpush3.bf16.msra.mxu0 %v3654_v22 }
 0xaec   : > { %3480 = vmatprep.subr.bf16.mxu0 %v3655_v8 }
 0xaed   : > { %3505 = vmatpush3.bf16.msra.mxu1 %v3654_v22 }
 0xaee   : > { %3498 = vmatprep.subr.bf16.mxu1 %v3655_v8 }
 0xaef   : > { %3481 = vmatpush3.bf16.msra.mxu0 %v3655_v8 }
 0xaf0   : > { %3482 = vmatprep.subr.bf16.mxu0 %v3656_v30 }
 0xaf1   : > { %3506 = vmatpush3.bf16.msra.mxu1 %v3655_v8 }
 0xaf2   : > { %3499 = vmatprep.subr.bf16.mxu1 %v3656_v30 }
 0xaf3   : > { %3483 = vmatpush3.bf16.msra.mxu0 %v3656_v30 }
 0xaf5   : > { %3507 = vmatpush3.bf16.msra.mxu1 %v3656_v30 }
 0xb96   : > { %v3438_v6 = vpop.f32.mrf.mxu0 }
 0xb97   : > { %v2451_v9 = vmul.f32 %v3438_v6, %v3438_v6  ;;  %v2483_v0 = vsub.f32 %v4033_v38, %v3438_v6  ;;  %v2512_v38 = vrot.slane %v3982_v42, %v1310_v58 }
 0xb98   : > { %v2341_v31 = vpop.f32.mrf.mxu0  ;;  %v3462_v10 = vpop.f32.mrf.mxu1 }
 0xb99   : > { %v2449_v29 = vmul.f32 %v2341_v31, %v2341_v31  ;;  %v2459_v11 = vsub.f32 %v3462_v10, %v2451_v9  ;;  %v2481_v63 = vsub.f32 %v4030_v33, %v2341_v31 }
 0xb9a   : > { %v3439_v12 = vpop.f32.mrf.mxu0  ;;  %v2418_v23 = vpop.f32.mrf.mxu1 }
 0xb9b   : > { %v2452_v14 = vmul.f32 %v3439_v12, %v3439_v12  ;;  %v2467_v17 = vadd.f32 1e-05, %v2459_v11  ;;  %v2457_v19 = vsub.f32 %v2418_v23, %v2449_v29  ;;  %v2484_v1 = vsub.f32 %v4027_v45, %v3439_v12 }
 0xb9c   : > { %v2344_v57 = vpop.f32.mrf.mxu0  ;;  %v3463_v24 = vpop.f32.mrf.mxu1 }
 0xb9d   : > { %v2450_v20 = vmul.f32 %v2344_v57, %v2344_v57  ;;  %v2465_v52 = vadd.f32 1e-05, %v2457_v19  ;;  %v2460_v46 = vsub.f32 %v3463_v24, %v2452_v14  ;;  %3673 = vrsqrt.f32 %v2467_v17 }
 0xb9e   : > { %v3442_v44 = vpop.f32.mrf.mxu0  ;;  %v2421_v26 = vpop.f32.mrf.mxu1  ;;  %v2482_v22 = vsub.f32 %v4036_v39, %v2344_v57 }
 0xb9f   : > { %v2455_v25 = vmul.f32 %v3442_v44, %v3442_v44  ;;  %3675 = vrsqrt.f32 %v2465_v52  ;;  %v2468_v27 = vadd.f32 1e-05, %v2460_v46  ;;  %v2458_v34 = vsub.f32 %v2421_v26, %v2450_v20 }
 0xba0   : > { %v2357_v32 = vpop.f32.mrf.mxu0  ;;  %v3466_v2 = vpop.f32.mrf.mxu1  ;;  %v2487_v5 = vsub.f32 %v4057_v59, %v3442_v44 }
 0xba1   : > { %v2453_v40 = vmul.f32 %v2357_v32, %v2357_v32  ;;  %3677 = vrsqrt.f32 %v2468_v27  ;;  %v2466_v13 = vadd.f32 1e-05, %v2458_v34  ;;  %v2463_v41 = vsub.f32 %v3466_v2, %v2455_v25 }
 0xba2   : > { %v3443_v15 = vpop.f32.mrf.mxu0  ;;  %v2434_v18 = vpop.f32.mrf.mxu1  ;;  %v2485_v31 = vsub.f32 %v4051_v54, %v2357_v32 }
 0xba3   : > { %v2456_v43 = vmul.f32 %v3443_v15, %v3443_v15  ;;  %3679 = vrsqrt.f32 %v2466_v13  ;;  %v2471_v16 = vadd.f32 1e-05, %v2463_v41  ;;  %v2461_v47 = vsub.f32 %v2434_v18, %v2453_v40 }
 0xba4   : > { %v2360_v49 = vpop.f32.mrf.mxu0  ;;  %v3467_v51 = vpop.f32.mrf.mxu1  ;;  %v2488_v39 = vsub.f32 %v4054_v55, %v3443_v15 }
 0xba5   : > { %v2454_v50 = vmul.f32 %v2360_v49, %v2360_v49  ;;  %v2469_v53 = vadd.f32 1e-05, %v2461_v47  ;;  %v2464_v56 = vsub.f32 %v3467_v51, %v2456_v43  ;;  %3681 = vrsqrt.f32 %v2471_v16 }
 0xba6   : > { %v2437_v61 = vpop.f32.mrf.mxu1  ;;  %v2486_v21 = vsub.f32 %v4060_v60, %v2360_v49  ;;  %v2869_v60 = vld [vmem:[%s4134_s4] ss:$0 sm:$0xff] }
 0xba7   : > { %3683 = vrsqrt.f32 %v2469_v53  ;;  %v2472_v62 = vadd.f32 1e-05, %v2464_v56  ;;  %v2462_v36 = vsub.f32 %v2437_v61, %v2454_v50 }
 0xba9   : > { %3685 = vrsqrt.f32 %v2472_v62  ;;  %v2470_v35 = vadd.f32 1e-05, %v2462_v36 }
 0xbaa   : > { %v3674_v37 = vpop.eup %3673 }
 0xbab   : > { %3687 = vrsqrt.f32 %v2470_v35  ;;  %v2491_v28 = vmul.f32 %v3674_v37, %v2483_v0 }
 0xbac   : > { %v3676_v48 = vpop.eup %3675 }
 0xbad   : > { %v2489_v3 = vmul.f32 %v3676_v48, %v2481_v63  ;;  %v2503_v6 = vmul.f32 %v2500_v7, %v2491_v28 }
 0xbae   : > { %v3678_v4 = vpop.eup %3677 }
 0xbaf   : > { %v2492_v8 = vmul.f32 %v3678_v4, %v2484_v1  ;;  %v2501_v29 = vmul.f32 %v2500_v7, %v2489_v3  ;;  %v2515_v20 = vadd.f32 %v2512_v38, %v2503_v6 }
 0xbb0   : > { %v3680_v30 = vpop.eup %3679 }
 0xbb1   : > { %v2490_v9 = vmul.f32 %v3680_v30, %v2482_v22  ;;  %v2504_v33 = vmul.f32 %v2500_v7, %v2492_v8  ;;  %v2513_v14 = vadd.f32 %v2512_v38, %v2501_v29 }
 0xbb2   : > { %v3682_v45 = vpop.eup %3681 }
 0xbb3   : > { %v2502_v10 = vmul.f32 %v2500_v7, %v2490_v9  ;;  %v2516_v12 = vadd.f32 %v2512_v38, %v2504_v33  ;;  %v2495_v57 = vmul.f32 %v3682_v45, %v2487_v5 }
 0xbb4   : > { %v3684_v11 = vpop.eup %3683 }
 0xbb5   : > { %v2514_v23 = vadd.f32 %v2512_v38, %v2502_v10  ;;  %v2493_v17 = vmul.f32 %v3684_v11, %v2485_v31  ;;  %v2522_v52 = vpack.c.bf16 %v2516_v12, %v2515_v20  ;;  %v2507_v44 = vmul.f32 %v2500_v7, %v2495_v57 }
 0xbb6   : > { %v3686_v19 = vpop.eup %3685 }
 0xbb7   : > { %v2496_v58 = vmul.f32 %v3686_v19, %v2488_v39  ;;  %v2521_v42 = vpack.c.bf16 %v2514_v23, %v2513_v14  ;;  %v2505_v46 = vmul.f32 %v2500_v7, %v2493_v17  ;;  %v2519_v34 = vadd.f32 %v2512_v38, %v2507_v44 }
 0xbb8   : > { %v3688_v24 = vpop.eup %3687 }
 0xbb9   : > { %3484 = vmatprep.mubr.bf16.mxu0 %v2521_v42  ;;  %v2494_v54 = vmul.f32 %v3688_v24, %v2486_v21  ;;  %v2508_v59 = vmul.f32 %v2500_v7, %v2496_v58  ;;  %v2517_v26 = vadd.f32 %v2512_v38, %v2505_v46 }
 0xbba   : > { %3485 = vmatmul.mubr.bf16.vlgmr.msra.gmra.mxu0 %v2522_v52 }
 0xbbb   : > { %v2506_v55 = vmul.f32 %v2500_v7, %v2494_v54  ;;  %v2520_v25 = vadd.f32 %v2512_v38, %v2508_v59 }
 0xbbd   : > { %v2518_v27 = vadd.f32 %v2512_v38, %v2506_v55  ;;  %v2524_v40 = vpack.c.bf16 %v2520_v25, %v2519_v34 }
 0xbbf   : > { %v2523_v32 = vpack.c.bf16 %v2518_v27, %v2517_v26 }
 0xbc1   : > { %3488 = vmatprep.mubr.bf16.mxu1 %v2523_v32 }
 0xbc2   : > { %3489 = vmatmul.mubr.bf16.vlgmr.msra.gmra.mxu1 %v2524_v40 }
 0xc7a   : > { %v3486_v2 = vpop.f32.mrf.mxu0 }
 0xc7b   : > { %v2639_v13 = vadd.f32 %v3486_v2, %v2869_v60 }
 0xc7c   : > { %v2630_v41 = vpop.f32.mrf.mxu0 }
 0xc7d   : > { %2664 = vst.msk [vmem:[%s256_s15 + $0x10] sm:$0xff] %vm2661_vm0, %v2639_v13  ;;  %v2631_v15 = vadd.f32 %v2869_v60, %v2630_v41 }
 0xc7e   : > { %v3487_v43 = vpop.f32.mrf.mxu0 }
 0xc7f   : > { %2662 = vst.msk [vmem:[%s256_s15] sm:$0xff] %vm2661_vm0, %v2631_v15  ;;  %v2642_v18 = vadd.f32 %v3487_v43, %v2869_v60 }
 0xc80   : > { %v2633_v16 = vpop.f32.mrf.mxu0 }
 0xc81   : > { %2665 = vst.msk [vmem:[%s256_s15 + $0x18] sm:$0xff] %vm2661_vm0, %v2642_v18  ;;  %v2634_v47 = vadd.f32 %v2869_v60, %v2633_v16 }
 0xc82   : > { %v3490_v49 = vpop.f32.mrf.mxu1 }
 0xc83   : > { %2663 = vst.msk [vmem:[%s256_s15 + $0x8] sm:$0xff] %vm2661_vm0, %v2634_v47  ;;  %v2655_v50 = vadd.f32 %v3490_v49, %v2869_v60 }
 0xc84   : > { %v2646_v51 = vpop.f32.mrf.mxu1 }
 0xc85   : > { %2668 = vst.msk [vmem:[%s256_s15 + $0x30] sm:$0xff] %vm2661_vm0, %v2655_v50  ;;  %v2647_v53 = vadd.f32 %v2869_v60, %v2646_v51 }
 0xc86   : > { %v3491_v56 = vpop.f32.mrf.mxu1 }
 0xc87   : > { %2666 = vst.msk [vmem:[%s256_s15 + $0x20] sm:$0xff] %vm2661_vm0, %v2647_v53  ;;  %v2658_v61 = vadd.f32 %v3491_v56, %v2869_v60 }
 0xc88   : > { %v2649_v62 = vpop.f32.mrf.mxu1 }
 0xc89   : > { %2669 = vst.msk [vmem:[%s256_s15 + $0x38] sm:$0xff] %vm2661_vm0, %v2658_v61  ;;  %v2650_v36 = vadd.f32 %v2869_v60, %v2649_v62 }
 0xc8b   : > { %2667 = vst.msk [vmem:[%s256_s15 + $0x28] sm:$0xff] %vm2661_vm0, %v2650_v36 }
 0xc8c PF: > { %s17_s18 = sadd.s32 1, %s3763_s18  }
 0xc8d   : > { %p14_p2 = scmp.ge.s32.totalorder %s17_s18, 4  }
 0xc8f   :  { %16 = sbr.rel (!%p14_p2) target bundleno = 2 (0x2), region = 79 }
 0xc94   :  { %2692 = vsyncpa [#allocation3], 1 }
 0xc95   :  { %2694 = vsyncpa [#allocation3 + $0x1], 1 }
 0xc96   :  { %2695 = vsyncpa [#allocation5], 1 }

</bundles_post_ra>
